<compile_context>
chip_gen: v6e
topology: v6e:2x2x1
jax: 0.10.0
libtpu: 0.0.40
codegen_flags: <defaults>
</compile_context>

<pallas_src>
import functools

import jax
import jax.numpy as jnp
from jax import lax
from jax.experimental import pallas as pl
from jax.experimental.pallas import tpu as pltpu


def _lambda_kernel(x_ref, w_ref, e_ref, o_ref, acc_ref, v2_ref, q_ref,
                   *, heads, kk, uu, vv):
    k = pl.program_id(0)
    bsz = x_ref.shape[0]
    nq = heads * kk

    # ---- step 0: fused projections, softmax, content lambda (y_c) ----------
    @pl.when(k == 0)
    def _init():
        w = w_ref[...]                                             # (R, c+1)
        for bb in range(bsz):
            # one fused 1x1-conv matmul: rows = [q | keys | values], bias via
            # the appended ones-channel column.
            proj = jnp.dot(w, x_ref[bb], preferred_element_type=jnp.float32)  # (R, n)
            qb = proj[:nq]                                         # (heads*kk, n)
            keys = proj[nq:nq + kk]                                # (kk, n)
            vals = proj[nq + kk:]                                  # (vv, n)

            # softmax over the spatial dimension (per k row)
            keys = keys - jnp.max(keys, axis=-1, keepdims=True)
            p = jnp.exp(keys)
            p = p * pl.reciprocal(jnp.sum(p, axis=-1, keepdims=True), approx=True)

            # content lambda: lambda_c[k, v] = sum_m p[k, m] * vals[v, m]
            lam_cT = lax.dot_general(vals, p, (((1,), (1,)), ((), ())),
                                     preferred_element_type=jnp.float32)      # (vv, kk)

            # y_c (initializes the accumulator): y_c[h] = lambda_c^T @ q_h
            for h in range(heads):
                qh = qb[h * kk:(h + 1) * kk, :]                    # (kk, n)
                acc_ref[bb, h * vv:(h + 1) * vv, :] = jnp.dot(
                    lam_cT, qh, preferred_element_type=jnp.float32)

            # cache values (bf16: LHS of the streamed E contraction) + queries
            v2_ref[bb * vv:(bb + 1) * vv, :] = vals.astype(v2_ref.dtype)
            q_ref[bb, :, :] = qb

    # ---- every step: positional lambda for this k, accumulate y_p ----------
    # lambda_p_k = V @ E[k] for all batches at once (b*vv rows on the MXU,
    # bf16 x bf16 with f32 accumulation).
    lp = jnp.dot(v2_ref[...], e_ref[0], preferred_element_type=jnp.float32)   # (b*vv, n)

    for bb in range(bsz):
        lpb = lp[bb * vv:(bb + 1) * vv, :]                         # (vv, n)
        parts = []
        for h in range(heads):
            qrow = q_ref[bb, pl.ds(h * kk + k, 1), :]              # (1, n)
            parts.append(qrow * lpb)                               # (vv, n)
        acc_ref[bb] = acc_ref[bb] + jnp.concatenate(parts, axis=0)

    # ---- last step: single lane-dense store ---------------------------------
    @pl.when(k == pl.num_programs(0) - 1)
    def _store():
        o_ref[...] = acc_ref[...].astype(o_ref.dtype)


def _build_position_matrix(emb, w, h, m):
    """E[k, (x',y'), (x,y)] = emb[k, 0, 0, x'-x+pad, y'-y+pad] (0 outside window)."""
    kk = emb.shape[0]
    pad = (m - 1) // 2
    xs = jnp.arange(w)
    ys = jnp.arange(h)
    ii = (xs[None, :] - xs[:, None]) + pad            # ii[x, x'] = x' - x + pad
    jj = (ys[None, :] - ys[:, None]) + pad            # jj[y, y'] = y' - y + pad
    mask = (((ii >= 0) & (ii < m))[:, :, None, None]
            & ((jj >= 0) & (jj < m))[None, None, :, :])            # (w, w, h, h)
    emb2 = emb[:, 0, 0]                                            # (kk, m, m)
    e = emb2[:, jnp.clip(ii, 0, m - 1)][:, :, :, jnp.clip(jj, 0, m - 1)]  # (kk,w,w,h,h)
    e = e * mask[None].astype(emb.dtype)                           # [k, x, x', y, y']
    # -> [k, x', y', x, y] -> (kk, N, N)
    return jnp.transpose(e, (0, 2, 4, 1, 3)).reshape(kk, w * h, w * h)


def lambda_layer_forward(x, params, *, heads, kk, uu, vv, m):
    b, c, w, h = x.shape
    n = w * h
    # TODO(synk): local-context path for u > 1 relies on PyTorch's raw .view()
    # reinterpretation of (B, vv, u, wh) as (B, u, vv, w, h); only u == 1 here.
    assert uu == 1
    assert m > 0
    eps = 1e-5
    # TODO(synk): BatchNorm2d is applied in eval mode with deterministic
    # running stats (mean=0, var=1); training-mode batch stats not replicated.
    sq = params["bn_q_gamma"] / jnp.sqrt(1.0 + eps)
    sv = params["bn_v_gamma"] / jnp.sqrt(1.0 + eps)

    # Fold the BN scales into the 1x1-conv weights, fuse the three projections
    # into one weight matrix, and fold the biases in via an appended
    # ones-channel column.
    wq_s = params["w_q"] * sq[:, None]                   # (heads*kk, c)
    wv_s = params["w_v"] * sv[:, None]                   # (vv*uu, c)
    w_all = jnp.concatenate([wq_s, params["w_k"], wv_s], axis=0)         # (R, c)
    b_all = jnp.concatenate([params["bn_q_beta"],
                             jnp.zeros((kk * uu,), x.dtype),
                             params["bn_v_beta"]], axis=0)               # (R,)
    w_aug = jnp.concatenate([w_all, b_all[:, None]], axis=1)             # (R, c+1)

    xf = jnp.concatenate([x.reshape(b, c, n),
                          jnp.ones((b, 1, n), x.dtype)], axis=1)         # (b, c+1, n)

    # Dense relative-position matrices, streamed per-k in bf16 (halves HBM
    # traffic on the dominant term; accumulation stays in f32).
    e_mat = _build_position_matrix(params["embedding"], w, h, m).astype(jnp.bfloat16)

    rows = heads * kk + kk * uu + vv * uu
    kernel = functools.partial(_lambda_kernel, heads=heads, kk=kk, uu=uu, vv=vv)
    out = pl.pallas_call(
        kernel,
        out_shape=jax.ShapeDtypeStruct((b, heads * vv, n), x.dtype),
        grid_spec=pltpu.PrefetchScalarGridSpec(
            num_scalar_prefetch=0,
            grid=(kk,),
            in_specs=[
                pl.BlockSpec((b, c + 1, n), lambda k: (0, 0, 0)),   # x (resident)
                pl.BlockSpec((rows, c + 1), lambda k: (0, 0)),      # fused weights
                pl.BlockSpec((1, n, n), lambda k: (k, 0, 0)),       # E[k] bf16 stream
            ],
            out_specs=pl.BlockSpec((b, heads * vv, n), lambda k: (0, 0, 0)),
            scratch_shapes=[
                pltpu.VMEM((b, heads * vv, n), jnp.float32),   # y accumulator
                pltpu.VMEM((b * vv, n), jnp.bfloat16),         # cached values
                pltpu.VMEM((b, heads * kk, n), jnp.float32),   # cached queries
            ],
        ),
        compiler_params=pltpu.CompilerParams(
            dimension_semantics=("arbitrary",)),
    )(xf, w_aug, e_mat)
    return out.reshape(b, heads * vv, w, h)


def lambda_layer_reference(x, params, *, heads, kk, uu, vv, m):
    """Pure-JAX mirror of the PyTorch forward (eval-mode BN), for verification."""
    b, c, w, h = x.shape
    n = w * h
    eps = 1e-5
    hp = lax.Precision.HIGHEST
    xf = x.reshape(b, c, n)
    q = jnp.einsum("oc,bcn->bon", params["w_q"], xf, precision=hp)
    q = (q * (params["bn_q_gamma"] / jnp.sqrt(1.0 + eps))[None, :, None]
         + params["bn_q_beta"][None, :, None]).reshape(b, heads, kk, n)
    keys = jnp.einsum("oc,bcn->bon", params["w_k"], xf, precision=hp).reshape(b, kk, uu, n)
    sm = jax.nn.softmax(keys, axis=-1)
    vals = jnp.einsum("oc,bcn->bon", params["w_v"], xf, precision=hp)
    vals = (vals * (params["bn_v_gamma"] / jnp.sqrt(1.0 + eps))[None, :, None]
            + params["bn_v_beta"][None, :, None]).reshape(b, vv, uu, n)
    lambda_c = jnp.einsum("bkum,bvum->bkv", sm, vals, precision=hp)
    y_c = jnp.einsum("bhkn,bkv->bhvn", q, lambda_c, precision=hp)
    pad = (m - 1) // 2
    vals_r = vals.reshape(b, uu, vv, w, h)          # mirrors torch .view()
    lambda_p = lax.conv_general_dilated(
        vals_r, params["embedding"], window_strides=(1, 1, 1),
        padding=[(0, 0), (pad, pad), (pad, pad)],
        dimension_numbers=("NCDHW", "OIDHW", "NCDHW"),
        precision=hp)
    lambda_p = lambda_p.reshape(b, kk, vv, n)
    y_p = jnp.einsum("bhkn,bkvn->bhvn", q, lambda_p, precision=hp)
    return (y_c + y_p).reshape(b, heads * vv, w, h)


if __name__ == "__main__":
    # Module config (defaults: heads=4, k=16, u=1, m=23)
    in_channels, out_channels = 4, 32
    heads, kk, uu, m = 4, 16, 1, 23
    vv = out_channels // heads
    batch, w, h = 2, 16, 16

    key = jax.random.PRNGKey(0)
    k0, k1, k2, k3, k4, k5, k6, k7, k8 = jax.random.split(key, 9)
    params = {
        "w_q": 0.1 * jax.random.normal(k0, (kk * heads, in_channels), jnp.float32),
        "bn_q_gamma": 1.0 + 0.1 * jax.random.normal(k1, (kk * heads,), jnp.float32),
        "bn_q_beta": 0.1 * jax.random.normal(k2, (kk * heads,), jnp.float32),
        "w_k": 0.1 * jax.random.normal(k3, (kk * uu, in_channels), jnp.float32),
        "w_v": 0.1 * jax.random.normal(k4, (vv * uu, in_channels), jnp.float32),
        "bn_v_gamma": 1.0 + 0.1 * jax.random.normal(k5, (vv * uu,), jnp.float32),
        "bn_v_beta": 0.1 * jax.random.normal(k6, (vv * uu,), jnp.float32),
        "embedding": jax.random.normal(k7, (kk, uu, 1, m, m), jnp.float32),
    }
    x = jax.random.normal(k8, (batch, in_channels, w, h), jnp.float32)

    out = lambda_layer_forward(x, params, heads=heads, kk=kk, uu=uu, vv=vv, m=m)
    out = jax.block_until_ready(out)

    ref = lambda_layer_reference(x, params, heads=heads, kk=kk, uu=uu, vv=vv, m=m)
    ref = jax.block_until_ready(ref)

    assert out.shape == (batch, out_channels, w, h)
    max_err = float(jnp.max(jnp.abs(out - ref)))
    # bf16 streaming of E / values + approx softmax reciprocal -> slightly
    # looser tolerance than pure-f32; still catches layout/semantic bugs.
    tol = 2e-2 * (1.0 + float(jnp.max(jnp.abs(ref))))
    assert max_err < tol, f"max_err={max_err} tol={tol}"
    print("KERNEL_OK")
</pallas_src>

<mosaic_0001>
module attributes {stable_mosaic.version = 11 : i64} {
  func.func @_lambda_kernel(%arg0: i32, %arg1: memref<2x5x256xf32, #tpu.memory_space<vmem>>, %arg2: memref<88x5xf32, #tpu.memory_space<vmem>>, %arg3: memref<1x256x256xbf16, #tpu.memory_space<vmem>>, %arg4: memref<2x32x256xf32, #tpu.memory_space<vmem>>, %arg5: memref<2x32x256xf32, #tpu.memory_space<vmem>>, %arg6: memref<16x256xbf16, #tpu.memory_space<vmem>>, %arg7: memref<2x64x256xf32, #tpu.memory_space<vmem>>) attributes {dimension_semantics = [#tpu.dimension_semantics<arbitrary>], iteration_bounds = array<i64: 16>, scalar_prefetch = 0 : i64, scratch_operands = 3 : i64, tpu.core_type = #tpu.core_type<tc>, window_params = [{pipeline_mode = #tpu.pipeline_mode<synchronous>, transform_indices = @transform_0, window_bounds = array<i64: 2, 5, 256>}, {pipeline_mode = #tpu.pipeline_mode<synchronous>, transform_indices = @transform_1, window_bounds = array<i64: 88, 5>}, {transform_indices = @transform_2, window_bounds = array<i64: 1, 256, 256>}, {pipeline_mode = #tpu.pipeline_mode<synchronous>, transform_indices = @transform_3, window_bounds = array<i64: 2, 32, 256>}]} {
    %c0_i32 = arith.constant 0 : i32
    %0 = arith.cmpi eq, %arg0, %c0_i32 : i32
    %1 = arith.extui %0 : i1 to i32
    %c0_i32_0 = arith.constant 0 : i32
    %2 = arith.cmpi ne, %1, %c0_i32_0 : i32
    scf.if %2 {
      %c0_38 = arith.constant 0 : index
      %c0_39 = arith.constant 0 : index
      %74 = vector.load %arg2[%c0_38, %c0_39] : memref<88x5xf32, #tpu.memory_space<vmem>>, vector<88x5xf32>
      %c0_40 = arith.constant 0 : index
      %c0_41 = arith.constant 0 : index
      %c0_42 = arith.constant 0 : index
      %75 = vector.load %arg1[%c0_40, %c0_41, %c0_42] : memref<2x5x256xf32, #tpu.memory_space<vmem>>, vector<1x5x256xf32>
      %76 = vector.shape_cast %75 : vector<1x5x256xf32> to vector<5x256xf32>
      %cst_43 = arith.constant dense<0.000000e+00> : vector<88x256xf32>
      %77 = tpu.matmul %74, %76, %cst_43 {dimension_numbers = #tpu.dot_dimension_numbers<[1], [0], [0], [1], [0, 0, 1, 1], [], []>} : vector<88x5xf32>, vector<5x256xf32>, vector<88x256xf32> -> vector<88x256xf32>
      %78 = vector.extract_strided_slice %77 {offsets = [0, 0], sizes = [64, 256], strides = [1, 1]} : vector<88x256xf32> to vector<64x256xf32>
      %79 = vector.extract_strided_slice %77 {offsets = [64, 0], sizes = [16, 256], strides = [1, 1]} : vector<88x256xf32> to vector<16x256xf32>
      %80 = vector.extract_strided_slice %77 {offsets = [80, 0], sizes = [8, 256], strides = [1, 1]} : vector<88x256xf32> to vector<8x256xf32>
      %cst_44 = arith.constant dense<0xFF800000> : vector<16xf32>
      %81 = vector.multi_reduction <maximumf>, %79, %cst_44 [1] : vector<16x256xf32> to vector<16xf32>
      %82 = vector.shape_cast %81 : vector<16xf32> to vector<16x1xf32>
      %83 = vector.broadcast %82 : vector<16x1xf32> to vector<16x256xf32>
      %84 = arith.subf %79, %83 : vector<16x256xf32>
      %85 = math.exp %84 : vector<16x256xf32>
      %cst_45 = arith.constant dense<0.000000e+00> : vector<16xf32>
      %86 = vector.multi_reduction <add>, %85, %cst_45 [1] : vector<16x256xf32> to vector<16xf32>
      %87 = vector.shape_cast %86 : vector<16xf32> to vector<16x1xf32>
      %88 = tpu.reciprocal %87 {approx = true} : vector<16x1xf32> -> vector<16x1xf32>
      %89 = vector.broadcast %88 : vector<16x1xf32> to vector<16x256xf32>
      %90 = arith.mulf %85, %89 : vector<16x256xf32>
      %cst_46 = arith.constant dense<0.000000e+00> : vector<8x16xf32>
      %91 = tpu.matmul %80, %90, %cst_46 {dimension_numbers = #tpu.dot_dimension_numbers<[1], [1], [0], [0], [0, 0, 1, 0], [], []>} : vector<8x256xf32>, vector<16x256xf32>, vector<8x16xf32> -> vector<8x16xf32>
      %92 = vector.extract_strided_slice %78 {offsets = [0, 0], sizes = [16, 256], strides = [1, 1]} : vector<64x256xf32> to vector<16x256xf32>
      %cst_47 = arith.constant dense<0.000000e+00> : vector<8x256xf32>
      %93 = tpu.matmul %91, %92, %cst_47 {dimension_numbers = #tpu.dot_dimension_numbers<[1], [0], [0], [1], [0, 0, 1, 1], [], []>} : vector<8x16xf32>, vector<16x256xf32>, vector<8x256xf32> -> vector<8x256xf32>
      %c0_48 = arith.constant 0 : index
      %c0_49 = arith.constant 0 : index
      %c0_50 = arith.constant 0 : index
      %94 = vector.load %arg5[%c0_48, %c0_49, %c0_50] : memref<2x32x256xf32, #tpu.memory_space<vmem>>, vector<1x8x256xf32>
      %95 = vector.shape_cast %94 : vector<1x8x256xf32> to vector<8x256xf32>
      %96 = vector.shape_cast %93 : vector<8x256xf32> to vector<1x8x256xf32>
      tpu.vector_store %arg5[%c0_48, %c0_49, %c0_50], %96 {strides = array<i32>} : memref<2x32x256xf32, #tpu.memory_space<vmem>>, vector<1x8x256xf32>,
      %97 = vector.extract_strided_slice %78 {offsets = [16, 0], sizes = [16, 256], strides = [1, 1]} : vector<64x256xf32> to vector<16x256xf32>
      %cst_51 = arith.constant dense<0.000000e+00> : vector<8x256xf32>
      %98 = tpu.matmul %91, %97, %cst_51 {dimension_numbers = #tpu.dot_dimension_numbers<[1], [0], [0], [1], [0, 0, 1, 1], [], []>} : vector<8x16xf32>, vector<16x256xf32>, vector<8x256xf32> -> vector<8x256xf32>
      %c0_52 = arith.constant 0 : index
      %c8 = arith.constant 8 : index
      %c0_53 = arith.constant 0 : index
      %99 = vector.load %arg5[%c0_52, %c8, %c0_53] : memref<2x32x256xf32, #tpu.memory_space<vmem>>, vector<1x8x256xf32>
      %100 = vector.shape_cast %99 : vector<1x8x256xf32> to vector<8x256xf32>
      %101 = vector.shape_cast %98 : vector<8x256xf32> to vector<1x8x256xf32>
      tpu.vector_store %arg5[%c0_52, %c8, %c0_53], %101 {strides = array<i32>} : memref<2x32x256xf32, #tpu.memory_space<vmem>>, vector<1x8x256xf32>,
      %102 = vector.extract_strided_slice %78 {offsets = [32, 0], sizes = [16, 256], strides = [1, 1]} : vector<64x256xf32> to vector<16x256xf32>
      %cst_54 = arith.constant dense<0.000000e+00> : vector<8x256xf32>
      %103 = tpu.matmul %91, %102, %cst_54 {dimension_numbers = #tpu.dot_dimension_numbers<[1], [0], [0], [1], [0, 0, 1, 1], [], []>} : vector<8x16xf32>, vector<16x256xf32>, vector<8x256xf32> -> vector<8x256xf32>
      %c0_55 = arith.constant 0 : index
      %c16 = arith.constant 16 : index
      %c0_56 = arith.constant 0 : index
      %104 = vector.load %arg5[%c0_55, %c16, %c0_56] : memref<2x32x256xf32, #tpu.memory_space<vmem>>, vector<1x8x256xf32>
      %105 = vector.shape_cast %104 : vector<1x8x256xf32> to vector<8x256xf32>
      %106 = vector.shape_cast %103 : vector<8x256xf32> to vector<1x8x256xf32>
      tpu.vector_store %arg5[%c0_55, %c16, %c0_56], %106 {strides = array<i32>} : memref<2x32x256xf32, #tpu.memory_space<vmem>>, vector<1x8x256xf32>,
      %107 = vector.extract_strided_slice %78 {offsets = [48, 0], sizes = [16, 256], strides = [1, 1]} : vector<64x256xf32> to vector<16x256xf32>
      %cst_57 = arith.constant dense<0.000000e+00> : vector<8x256xf32>
      %108 = tpu.matmul %91, %107, %cst_57 {dimension_numbers = #tpu.dot_dimension_numbers<[1], [0], [0], [1], [0, 0, 1, 1], [], []>} : vector<8x16xf32>, vector<16x256xf32>, vector<8x256xf32> -> vector<8x256xf32>
      %c0_58 = arith.constant 0 : index
      %c24 = arith.constant 24 : index
      %c0_59 = arith.constant 0 : index
      %109 = vector.load %arg5[%c0_58, %c24, %c0_59] : memref<2x32x256xf32, #tpu.memory_space<vmem>>, vector<1x8x256xf32>
      %110 = vector.shape_cast %109 : vector<1x8x256xf32> to vector<8x256xf32>
      %111 = vector.shape_cast %108 : vector<8x256xf32> to vector<1x8x256xf32>
      tpu.vector_store %arg5[%c0_58, %c24, %c0_59], %111 {strides = array<i32>} : memref<2x32x256xf32, #tpu.memory_space<vmem>>, vector<1x8x256xf32>,
      %112 = arith.truncf %80 : vector<8x256xf32> to vector<8x256xbf16>
      %c0_60 = arith.constant 0 : index
      %c0_61 = arith.constant 0 : index
      %113 = vector.load %arg6[%c0_60, %c0_61] : memref<16x256xbf16, #tpu.memory_space<vmem>>, vector<8x256xbf16>
      tpu.vector_store %arg6[%c0_60, %c0_61], %112 {strides = array<i32>} : memref<16x256xbf16, #tpu.memory_space<vmem>>, vector<8x256xbf16>,
      %c0_62 = arith.constant 0 : index
      %c0_63 = arith.constant 0 : index
      %c0_64 = arith.constant 0 : index
      %114 = vector.load %arg7[%c0_62, %c0_63, %c0_64] : memref<2x64x256xf32, #tpu.memory_space<vmem>>, vector<1x64x256xf32>
      %115 = vector.shape_cast %114 : vector<1x64x256xf32> to vector<64x256xf32>
      %116 = vector.shape_cast %78 : vector<64x256xf32> to vector<1x64x256xf32>
      tpu.vector_store %arg7[%c0_62, %c0_63, %c0_64], %116 {strides = array<i32>} : memref<2x64x256xf32, #tpu.memory_space<vmem>>, vector<1x64x256xf32>,
      %c1_65 = arith.constant 1 : index
      %c0_66 = arith.constant 0 : index
      %c0_67 = arith.constant 0 : index
      %117 = vector.load %arg1[%c1_65, %c0_66, %c0_67] : memref<2x5x256xf32, #tpu.memory_space<vmem>>, vector<1x5x256xf32>
      %118 = vector.shape_cast %117 : vector<1x5x256xf32> to vector<5x256xf32>
      %cst_68 = arith.constant dense<0.000000e+00> : vector<88x256xf32>
      %119 = tpu.matmul %74, %118, %cst_68 {dimension_numbers = #tpu.dot_dimension_numbers<[1], [0], [0], [1], [0, 0, 1, 1], [], []>} : vector<88x5xf32>, vector<5x256xf32>, vector<88x256xf32> -> vector<88x256xf32>
      %120 = vector.extract_strided_slice %119 {offsets = [0, 0], sizes = [64, 256], strides = [1, 1]} : vector<88x256xf32> to vector<64x256xf32>
      %121 = vector.extract_strided_slice %119 {offsets = [64, 0], sizes = [16, 256], strides = [1, 1]} : vector<88x256xf32> to vector<16x256xf32>
      %122 = vector.extract_strided_slice %119 {offsets = [80, 0], sizes = [8, 256], strides = [1, 1]} : vector<88x256xf32> to vector<8x256xf32>
      %cst_69 = arith.constant dense<0xFF800000> : vector<16xf32>
      %123 = vector.multi_reduction <maximumf>, %121, %cst_69 [1] : vector<16x256xf32> to vector<16xf32>
      %124 = vector.shape_cast %123 : vector<16xf32> to vector<16x1xf32>
      %125 = vector.broadcast %124 : vector<16x1xf32> to vector<16x256xf32>
      %126 = arith.subf %121, %125 : vector<16x256xf32>
      %127 = math.exp %126 : vector<16x256xf32>
      %cst_70 = arith.constant dense<0.000000e+00> : vector<16xf32>
      %128 = vector.multi_reduction <add>, %127, %cst_70 [1] : vector<16x256xf32> to vector<16xf32>
      %129 = vector.shape_cast %128 : vector<16xf32> to vector<16x1xf32>
      %130 = tpu.reciprocal %129 {approx = true} : vector<16x1xf32> -> vector<16x1xf32>
      %131 = vector.broadcast %130 : vector<16x1xf32> to vector<16x256xf32>
      %132 = arith.mulf %127, %131 : vector<16x256xf32>
      %cst_71 = arith.constant dense<0.000000e+00> : vector<8x16xf32>
      %133 = tpu.matmul %122, %132, %cst_71 {dimension_numbers = #tpu.dot_dimension_numbers<[1], [1], [0], [0], [0, 0, 1, 0], [], []>} : vector<8x256xf32>, vector<16x256xf32>, vector<8x16xf32> -> vector<8x16xf32>
      %134 = vector.extract_strided_slice %120 {offsets = [0, 0], sizes = [16, 256], strides = [1, 1]} : vector<64x256xf32> to vector<16x256xf32>
      %cst_72 = arith.constant dense<0.000000e+00> : vector<8x256xf32>
      %135 = tpu.matmul %133, %134, %cst_72 {dimension_numbers = #tpu.dot_dimension_numbers<[1], [0], [0], [1], [0, 0, 1, 1], [], []>} : vector<8x16xf32>, vector<16x256xf32>, vector<8x256xf32> -> vector<8x256xf32>
      %c1_73 = arith.constant 1 : index
      %c0_74 = arith.constant 0 : index
      %c0_75 = arith.constant 0 : index
      %136 = vector.load %arg5[%c1_73, %c0_74, %c0_75] : memref<2x32x256xf32, #tpu.memory_space<vmem>>, vector<1x8x256xf32>
      %137 = vector.shape_cast %136 : vector<1x8x256xf32> to vector<8x256xf32>
      %138 = vector.shape_cast %135 : vector<8x256xf32> to vector<1x8x256xf32>
      tpu.vector_store %arg5[%c1_73, %c0_74, %c0_75], %138 {strides = array<i32>} : memref<2x32x256xf32, #tpu.memory_space<vmem>>, vector<1x8x256xf32>,
      %139 = vector.extract_strided_slice %120 {offsets = [16, 0], sizes = [16, 256], strides = [1, 1]} : vector<64x256xf32> to vector<16x256xf32>
      %cst_76 = arith.constant dense<0.000000e+00> : vector<8x256xf32>
      %140 = tpu.matmul %133, %139, %cst_76 {dimension_numbers = #tpu.dot_dimension_numbers<[1], [0], [0], [1], [0, 0, 1, 1], [], []>} : vector<8x16xf32>, vector<16x256xf32>, vector<8x256xf32> -> vector<8x256xf32>
      %c1_77 = arith.constant 1 : index
      %c8_78 = arith.constant 8 : index
      %c0_79 = arith.constant 0 : index
      %141 = vector.load %arg5[%c1_77, %c8_78, %c0_79] : memref<2x32x256xf32, #tpu.memory_space<vmem>>, vector<1x8x256xf32>
      %142 = vector.shape_cast %141 : vector<1x8x256xf32> to vector<8x256xf32>
      %143 = vector.shape_cast %140 : vector<8x256xf32> to vector<1x8x256xf32>
      tpu.vector_store %arg5[%c1_77, %c8_78, %c0_79], %143 {strides = array<i32>} : memref<2x32x256xf32, #tpu.memory_space<vmem>>, vector<1x8x256xf32>,
      %144 = vector.extract_strided_slice %120 {offsets = [32, 0], sizes = [16, 256], strides = [1, 1]} : vector<64x256xf32> to vector<16x256xf32>
      %cst_80 = arith.constant dense<0.000000e+00> : vector<8x256xf32>
      %145 = tpu.matmul %133, %144, %cst_80 {dimension_numbers = #tpu.dot_dimension_numbers<[1], [0], [0], [1], [0, 0, 1, 1], [], []>} : vector<8x16xf32>, vector<16x256xf32>, vector<8x256xf32> -> vector<8x256xf32>
      %c1_81 = arith.constant 1 : index
      %c16_82 = arith.constant 16 : index
      %c0_83 = arith.constant 0 : index
      %146 = vector.load %arg5[%c1_81, %c16_82, %c0_83] : memref<2x32x256xf32, #tpu.memory_space<vmem>>, vector<1x8x256xf32>
      %147 = vector.shape_cast %146 : vector<1x8x256xf32> to vector<8x256xf32>
      %148 = vector.shape_cast %145 : vector<8x256xf32> to vector<1x8x256xf32>
      tpu.vector_store %arg5[%c1_81, %c16_82, %c0_83], %148 {strides = array<i32>} : memref<2x32x256xf32, #tpu.memory_space<vmem>>, vector<1x8x256xf32>,
      %149 = vector.extract_strided_slice %120 {offsets = [48, 0], sizes = [16, 256], strides = [1, 1]} : vector<64x256xf32> to vector<16x256xf32>
      %cst_84 = arith.constant dense<0.000000e+00> : vector<8x256xf32>
      %150 = tpu.matmul %133, %149, %cst_84 {dimension_numbers = #tpu.dot_dimension_numbers<[1], [0], [0], [1], [0, 0, 1, 1], [], []>} : vector<8x16xf32>, vector<16x256xf32>, vector<8x256xf32> -> vector<8x256xf32>
      %c1_85 = arith.constant 1 : index
      %c24_86 = arith.constant 24 : index
      %c0_87 = arith.constant 0 : index
      %151 = vector.load %arg5[%c1_85, %c24_86, %c0_87] : memref<2x32x256xf32, #tpu.memory_space<vmem>>, vector<1x8x256xf32>
      %152 = vector.shape_cast %151 : vector<1x8x256xf32> to vector<8x256xf32>
      %153 = vector.shape_cast %150 : vector<8x256xf32> to vector<1x8x256xf32>
      tpu.vector_store %arg5[%c1_85, %c24_86, %c0_87], %153 {strides = array<i32>} : memref<2x32x256xf32, #tpu.memory_space<vmem>>, vector<1x8x256xf32>,
      %154 = arith.truncf %122 : vector<8x256xf32> to vector<8x256xbf16>
      %c8_88 = arith.constant 8 : index
      %c0_89 = arith.constant 0 : index
      %155 = vector.load %arg6[%c8_88, %c0_89] : memref<16x256xbf16, #tpu.memory_space<vmem>>, vector<8x256xbf16>
      tpu.vector_store %arg6[%c8_88, %c0_89], %154 {strides = array<i32>} : memref<16x256xbf16, #tpu.memory_space<vmem>>, vector<8x256xbf16>,
      %c1_90 = arith.constant 1 : index
      %c0_91 = arith.constant 0 : index
      %c0_92 = arith.constant 0 : index
      %156 = vector.load %arg7[%c1_90, %c0_91, %c0_92] : memref<2x64x256xf32, #tpu.memory_space<vmem>>, vector<1x64x256xf32>
      %157 = vector.shape_cast %156 : vector<1x64x256xf32> to vector<64x256xf32>
      %158 = vector.shape_cast %120 : vector<64x256xf32> to vector<1x64x256xf32>
      tpu.vector_store %arg7[%c1_90, %c0_91, %c0_92], %158 {strides = array<i32>} : memref<2x64x256xf32, #tpu.memory_space<vmem>>, vector<1x64x256xf32>,
    } else {
    }
    %c0 = arith.constant 0 : index
    %c0_1 = arith.constant 0 : index
    %3 = vector.load %arg6[%c0, %c0_1] : memref<16x256xbf16, #tpu.memory_space<vmem>>, vector<16x256xbf16>
    %c0_2 = arith.constant 0 : index
    %c0_3 = arith.constant 0 : index
    %c0_4 = arith.constant 0 : index
    %4 = vector.load %arg3[%c0_2, %c0_3, %c0_4] : memref<1x256x256xbf16, #tpu.memory_space<vmem>>, vector<1x256x256xbf16>
    %5 = vector.shape_cast %4 : vector<1x256x256xbf16> to vector<256x256xbf16>
    %cst = arith.constant dense<0.000000e+00> : vector<16x256xf32>
    %6 = tpu.matmul %3, %5, %cst {dimension_numbers = #tpu.dot_dimension_numbers<[1], [0], [0], [1], [0, 0, 1, 1], [], []>} : vector<16x256xbf16>, vector<256x256xbf16>, vector<16x256xf32> -> vector<16x256xf32>
    %7 = vector.extract_strided_slice %6 {offsets = [0, 0], sizes = [8, 256], strides = [1, 1]} : vector<16x256xf32> to vector<8x256xf32>
    %c0_i32_5 = arith.constant 0 : i32
    %8 = arith.addi %c0_i32_5, %arg0 : i32
    %c0_6 = arith.constant 0 : index
    %9 = arith.index_cast %8 : i32 to index
    %c0_7 = arith.constant 0 : index
    %10 = vector.load %arg7[%c0_6, %9, %c0_7] : memref<2x64x256xf32, #tpu.memory_space<vmem>>, vector<1x1x256xf32>
    %11 = vector.shape_cast %10 : vector<1x1x256xf32> to vector<1x256xf32>
    %12 = vector.broadcast %11 : vector<1x256xf32> to vector<8x256xf32>
    %13 = arith.mulf %12, %7 : vector<8x256xf32>
    %c16_i32 = arith.constant 16 : i32
    %14 = arith.addi %c16_i32, %arg0 : i32
    %c0_8 = arith.constant 0 : index
    %15 = arith.index_cast %14 : i32 to index
    %c0_9 = arith.constant 0 : index
    %16 = vector.load %arg7[%c0_8, %15, %c0_9] : memref<2x64x256xf32, #tpu.memory_space<vmem>>, vector<1x1x256xf32>
    %17 = vector.shape_cast %16 : vector<1x1x256xf32> to vector<1x256xf32>
    %18 = vector.broadcast %17 : vector<1x256xf32> to vector<8x256xf32>
    %19 = arith.mulf %18, %7 : vector<8x256xf32>
    %c32_i32 = arith.constant 32 : i32
    %20 = arith.addi %c32_i32, %arg0 : i32
    %c0_10 = arith.constant 0 : index
    %21 = arith.index_cast %20 : i32 to index
    %c0_11 = arith.constant 0 : index
    %22 = vector.load %arg7[%c0_10, %21, %c0_11] : memref<2x64x256xf32, #tpu.memory_space<vmem>>, vector<1x1x256xf32>
    %23 = vector.shape_cast %22 : vector<1x1x256xf32> to vector<1x256xf32>
    %24 = vector.broadcast %23 : vector<1x256xf32> to vector<8x256xf32>
    %25 = arith.mulf %24, %7 : vector<8x256xf32>
    %c48_i32 = arith.constant 48 : i32
    %26 = arith.addi %c48_i32, %arg0 : i32
    %c0_12 = arith.constant 0 : index
    %27 = arith.index_cast %26 : i32 to index
    %c0_13 = arith.constant 0 : index
    %28 = vector.load %arg7[%c0_12, %27, %c0_13] : memref<2x64x256xf32, #tpu.memory_space<vmem>>, vector<1x1x256xf32>
    %29 = vector.shape_cast %28 : vector<1x1x256xf32> to vector<1x256xf32>
    %30 = vector.broadcast %29 : vector<1x256xf32> to vector<8x256xf32>
    %31 = arith.mulf %30, %7 : vector<8x256xf32>
    %c0_14 = arith.constant 0 : index
    %c0_15 = arith.constant 0 : index
    %c0_16 = arith.constant 0 : index
    %32 = vector.load %arg5[%c0_14, %c0_15, %c0_16] : memref<2x32x256xf32, #tpu.memory_space<vmem>>, vector<1x32x256xf32>
    %33 = vector.shape_cast %32 : vector<1x32x256xf32> to vector<32x256xf32>
    %34 = tpu.concatenate %13, %19, %25, %31 in 0 : vector<8x256xf32>, vector<8x256xf32>, vector<8x256xf32>, vector<8x256xf32> -> vector<32x256xf32>
    %35 = arith.addf %33, %34 : vector<32x256xf32>
    %c0_17 = arith.constant 0 : index
    %c0_18 = arith.constant 0 : index
    %c0_19 = arith.constant 0 : index
    %36 = vector.load %arg5[%c0_17, %c0_18, %c0_19] : memref<2x32x256xf32, #tpu.memory_space<vmem>>, vector<1x32x256xf32>
    %37 = vector.shape_cast %36 : vector<1x32x256xf32> to vector<32x256xf32>
    %38 = vector.shape_cast %35 : vector<32x256xf32> to vector<1x32x256xf32>
    tpu.vector_store %arg5[%c0_17, %c0_18, %c0_19], %38 {strides = array<i32>} : memref<2x32x256xf32, #tpu.memory_space<vmem>>, vector<1x32x256xf32>,
    %39 = vector.extract_strided_slice %6 {offsets = [8, 0], sizes = [8, 256], strides = [1, 1]} : vector<16x256xf32> to vector<8x256xf32>
    %c0_i32_20 = arith.constant 0 : i32
    %40 = arith.addi %c0_i32_20, %arg0 : i32
    %c1 = arith.constant 1 : index
    %41 = arith.index_cast %40 : i32 to index
    %c0_21 = arith.constant 0 : index
    %42 = vector.load %arg7[%c1, %41, %c0_21] : memref<2x64x256xf32, #tpu.memory_space<vmem>>, vector<1x1x256xf32>
    %43 = vector.shape_cast %42 : vector<1x1x256xf32> to vector<1x256xf32>
    %44 = vector.broadcast %43 : vector<1x256xf32> to vector<8x256xf32>
    %45 = arith.mulf %44, %39 : vector<8x256xf32>
    %c16_i32_22 = arith.constant 16 : i32
    %46 = arith.addi %c16_i32_22, %arg0 : i32
    %c1_23 = arith.constant 1 : index
    %47 = arith.index_cast %46 : i32 to index
    %c0_24 = arith.constant 0 : index
    %48 = vector.load %arg7[%c1_23, %47, %c0_24] : memref<2x64x256xf32, #tpu.memory_space<vmem>>, vector<1x1x256xf32>
    %49 = vector.shape_cast %48 : vector<1x1x256xf32> to vector<1x256xf32>
    %50 = vector.broadcast %49 : vector<1x256xf32> to vector<8x256xf32>
    %51 = arith.mulf %50, %39 : vector<8x256xf32>
    %c32_i32_25 = arith.constant 32 : i32
    %52 = arith.addi %c32_i32_25, %arg0 : i32
    %c1_26 = arith.constant 1 : index
    %53 = arith.index_cast %52 : i32 to index
    %c0_27 = arith.constant 0 : index
    %54 = vector.load %arg7[%c1_26, %53, %c0_27] : memref<2x64x256xf32, #tpu.memory_space<vmem>>, vector<1x1x256xf32>
    %55 = vector.shape_cast %54 : vector<1x1x256xf32> to vector<1x256xf32>
    %56 = vector.broadcast %55 : vector<1x256xf32> to vector<8x256xf32>
    %57 = arith.mulf %56, %39 : vector<8x256xf32>
    %c48_i32_28 = arith.constant 48 : i32
    %58 = arith.addi %c48_i32_28, %arg0 : i32
    %c1_29 = arith.constant 1 : index
    %59 = arith.index_cast %58 : i32 to index
    %c0_30 = arith.constant 0 : index
    %60 = vector.load %arg7[%c1_29, %59, %c0_30] : memref<2x64x256xf32, #tpu.memory_space<vmem>>, vector<1x1x256xf32>
    %61 = vector.shape_cast %60 : vector<1x1x256xf32> to vector<1x256xf32>
    %62 = vector.broadcast %61 : vector<1x256xf32> to vector<8x256xf32>
    %63 = arith.mulf %62, %39 : vector<8x256xf32>
    %c1_31 = arith.constant 1 : index
    %c0_32 = arith.constant 0 : index
    %c0_33 = arith.constant 0 : index
    %64 = vector.load %arg5[%c1_31, %c0_32, %c0_33] : memref<2x32x256xf32, #tpu.memory_space<vmem>>, vector<1x32x256xf32>
    %65 = vector.shape_cast %64 : vector<1x32x256xf32> to vector<32x256xf32>
    %66 = tpu.concatenate %45, %51, %57, %63 in 0 : vector<8x256xf32>, vector<8x256xf32>, vector<8x256xf32>, vector<8x256xf32> -> vector<32x256xf32>
    %67 = arith.addf %65, %66 : vector<32x256xf32>
    %c1_34 = arith.constant 1 : index
    %c0_35 = arith.constant 0 : index
    %c0_36 = arith.constant 0 : index
    %68 = vector.load %arg5[%c1_34, %c0_35, %c0_36] : memref<2x32x256xf32, #tpu.memory_space<vmem>>, vector<1x32x256xf32>
    %69 = vector.shape_cast %68 : vector<1x32x256xf32> to vector<32x256xf32>
    %70 = vector.shape_cast %67 : vector<32x256xf32> to vector<1x32x256xf32>
    tpu.vector_store %arg5[%c1_34, %c0_35, %c0_36], %70 {strides = array<i32>} : memref<2x32x256xf32, #tpu.memory_space<vmem>>, vector<1x32x256xf32>,
    %c15_i32 = arith.constant 15 : i32
    %71 = arith.cmpi eq, %arg0, %c15_i32 : i32
    %72 = arith.extui %71 : i1 to i32
    %c0_i32_37 = arith.constant 0 : i32
    %73 = arith.cmpi ne, %72, %c0_i32_37 : i32
    scf.if %73 {
      %c0_38 = arith.constant 0 : index
      %c0_39 = arith.constant 0 : index
      %c0_40 = arith.constant 0 : index
      %74 = vector.load %arg5[%c0_38, %c0_39, %c0_40] : memref<2x32x256xf32, #tpu.memory_space<vmem>>, vector<2x32x256xf32>
      %c0_41 = arith.constant 0 : index
      %c0_42 = arith.constant 0 : index
      %c0_43 = arith.constant 0 : index
      %75 = vector.load %arg4[%c0_41, %c0_42, %c0_43] : memref<2x32x256xf32, #tpu.memory_space<vmem>>, vector<2x32x256xf32>
      tpu.vector_store %arg4[%c0_41, %c0_42, %c0_43], %74 {strides = array<i32>} : memref<2x32x256xf32, #tpu.memory_space<vmem>>, vector<2x32x256xf32>,
    } else {
    }
    return
  }
  func.func @transform_0(%arg0: i32) -> (i32, i32, i32) {
    %c0_i32 = arith.constant 0 : i32
    %c0_i32_0 = arith.constant 0 : i32
    %c0_i32_1 = arith.constant 0 : i32
    %c0_i32_2 = arith.constant 0 : i32
    return %c0_i32, %c0_i32_0, %c0_i32_1 : i32, i32, i32
  }
  func.func @transform_1(%arg0: i32) -> (i32, i32) {
    %c0_i32 = arith.constant 0 : i32
    %c0_i32_0 = arith.constant 0 : i32
    %c0_i32_1 = arith.constant 0 : i32
    return %c0_i32, %c0_i32_0 : i32, i32
  }
  func.func @transform_2(%arg0: i32) -> (i32, i32, i32) {
    %c0_i32 = arith.constant 0 : i32
    %c0_i32_0 = arith.constant 0 : i32
    %c0_i32_1 = arith.constant 0 : i32
    return %arg0, %c0_i32, %c0_i32_0 : i32, i32, i32
  }
  func.func @transform_3(%arg0: i32) -> (i32, i32, i32) {
    %c0_i32 = arith.constant 0 : i32
    %c0_i32_0 = arith.constant 0 : i32
    %c0_i32_1 = arith.constant 0 : i32
    %c0_i32_2 = arith.constant 0 : i32
    return %c0_i32, %c0_i32_0, %c0_i32_1 : i32, i32, i32
  }
}

</mosaic_0001>

<bundles_post_ra>
// kernel: tpu_custom_call.1
= control target key start
LH: loop header
LB: loop body
LE: loop exit
PB: predicated region body
PF: predicated region fallthrough
CT: control target
= control target key end

     0   :  { %8 = vsyncpa [#allocation6], 0  ;;  %s2743_s0 = inlined_call_operand.vmem [shape: f32[2,5,256], index: 0, kind: input, shape index: {}]   ;;  %s2744_s1 = inlined_call_operand.vmem [shape: f32[88,5], index: 1, kind: input, shape index: {}]   ;;  %s2745_s2 = inlined_call_operand.hbm [shape: bf16[16,256,256], index: 2, kind: input, shape index: {}]   ;;  %s2746_s3 = inlined_call_operand.hbm [shape: f32[2,32,256], index: 3, kind: output, shape index: {}]  }
   0x1   :  { %10 = vsyncpa [#allocation6 + $0x1], 0 }
   0x2   :  { %11 = vsyncpa [#allocation7], 0  ;;  %s2277_s12 = smov 0   ;;  %s2279_s13 = smov 0  }
   0x3   :  { %s2281_s14 = smov 0   ;;  %s2283_s15 = smov 0  }
   0x4 LB: > { %s2296_s16 = sadd.s32 4294967295, %s2248_s15   ;;  %s2299_s17 = sadd.s32 1, %s2248_s15   ;;  %s2248_s15 = sphi %s2283_s15, %s2755_s15   ;;  %s2244_s14 = sphi %s2281_s14, %s2754_s14   ;;  %s2240_s13 = sphi %s2279_s13, %s2753_s13   ;;  %s2236_s12 = sphi %s2277_s12, %s2752_s12  }
   0x5   : > { %s63_s18 = ssub.s32 %s2248_s15, %s2299_s17  ;;  %s66_s19 = sadd.s32 1, %s2244_s14 }
   0x6   : > { %p64_p0 = scmp.eq.s32.totalorder %s63_s18, 0  ;;  %p73_p1 = scmp.ne.s32.totalorder %s2244_s14, %s2240_s13 }
   0x7   : > { %p74_p2 = scmp.eq.s32.totalorder %s2248_s15, 0  ;;  %p79_p3 = scmp.ne.s32.totalorder %s2240_s13, %s2236_s12 }
   0x8   : > { %s2309_s20 = scalar_select %p64_p0, %s2244_s14, %s66_s19  }
   0x9   : > { %p75_p4 = por %p74_p2, %p73_p1  ;;  %p80_p5 = scmp.eq.s32.totalorder %s2296_s16, 0 }
   0xa   : > { %p2042_p6 = scmp.lt.s32.totalorder %s2248_s15, 16  ;;  %s130_s22 = sand.u32 1, %s2244_s14  }
   0xb   : > { %p2313_p7 = por %p80_p5, %p79_p3  ;;  %s1926_s23 = sshll.u32 %s130_s22, 8 }
   0xc   : > { %s2025_s24 = sshll.u32 %s2248_s15, 12  ;;  %s134_s28 = scalar_lea.vmem [#allocation5], %s1926_s23 }
   0xd   : > { %s2748_s21 = scalar_select %p2313_p7, 1, 0 }
   0xe   : > { %s2322_s27 = scalar_lea.hbm %s2745_s2, %s2025_s24  ;;  %s141_s29 = sshll.u32 %s134_s28, 4  ;;  %s2324_s29 = int_to_ptr.vmem [resolvable:$true] %s141_s29 }
   0xf   : > { %p2326_p8 = pnand %p2042_p6, %p75_p4  ;;  %s2331_s4 = scalar_lea.sflag [#allocation6], %s130_s22 }
  0x10   : > { %s2158_s5 = scalar_lea.hbm %s2322_s27, 4096  ;;  %s2163_s8 = scalar_lea.hbm %s2745_s2, 65536 }
  0x11   : > { %p2159_p10 = scmp.ne.s32.totalorder %s2322_s27, %s2158_s5  ;;  %p2160_p11 = pneg %p2326_p8 }
  0x12   : > { %p2164_p0 = scmp.lt.s32.totalorder %s2322_s27, %s2745_s2  ;;  %p2165_p1 = scmp.lt.s32.totalorder %s2163_s8, %s2158_s5 }
  0x13   : > { %p2161_p12 = pnand %p2160_p11, %p2159_p10 }
  0x14   : > { %p2166_p2 = por %p2165_p1, %p2164_p0 }
  0x15   : > { %p2162_p13 = pneg %p2161_p12 }
  0x17   : > { %p2167_p3 = pnand %p2166_p2, %p2162_p13 }
  0x19   : > { %2170 = shalt.err (!%p2167_p3)
}
  0x1a   : > { %s2171_s11 = scalar_lea.vmem %s2324_s29, 4096  ;;  %s2250_s12 = smov [#allocation5]  }
  0x1b   : > { %p2172_p4 = scmp.ne.s32.totalorder %s2324_s29, %s2171_s11  ;;  %s2176_s18 = sshll.u32 %s2250_s12, 4  ;;  %s2177_s18 = int_to_ptr.vmem [resolvable:$false] %s2176_s18 }
  0x1c   : > { %s2178_s19 = scalar_lea.vmem %s2177_s18, 8192  ;;  %p2179_p10 = scmp.lt.s32.totalorder %s2324_s29, %s2177_s18 }
  0x1d   : > { %p2174_p5 = pnand %p2172_p4, %p2160_p11  ;;  %p2180_p12 = scmp.lt.s32.totalorder %s2178_s19, %s2171_s11 }
  0x1f   : > { %p2175_p6 = pneg %p2174_p5  ;;  %p2181_p9 = por %p2180_p12, %p2179_p10 }
  0x21   : > { %p2182_p7 = pnand %p2181_p9, %p2175_p6 }
  0x23   : > { %2185 = shalt.err (!%p2182_p7)
}
  0x24   : > { %s2251_s22 = smov 128   ;;  %s2252_s23 = smov 8  }
  0x25   : > { %2041 = dma.hbm_to_vmem [thread:$0]  (!%p2326_p8), %s2322_s27, 4096, %s2324_s29, %s2331_s4, %s2251_s22, %s2251_s22, %s2252_s23  }
  0x26   : > { %p149_p11 = scmp.lt.s32.totalorder %s2248_s15, 17  ;;  %p2750_p13 = scmp.ge.s32.totalorder %s2248_s15, 1 }
  0x28   : > { %p150_p0 = pnand %p2750_p13, %p149_p11 }
  0x29   : > { %s155_s24 = sand.u32 (!%p150_p0), 1, %s2240_s13   ;;  %p2751_p7 = scmp.ne.s32.totalorder (!%p150_p0), %s2748_s21, 0 }
  0x2a   : > { %153 = sbr.rel (%p150_p0) target bundleno = 2073 (0x819), region = 32  ;;  %s1930_s25 = sshll.u32 (!%p150_p0), %s155_s24, 8 }
  0x2b   : > { %s156_s26 = scalar_lea.sflag (!%p150_p0), [#allocation6], %s155_s24  ;;  %s2356_s28 = scalar_lea.vmem (!%p150_p0), [#allocation5], %s1930_s25 }
  0x2f   : > { %2227 = dma.done.wait (%p2751_p7), %s156_s26, 4096  }
  0x30   : > { %2229 = vsyncadd (%p2751_p7), %s156_s26, 4294963200  ;;  %p1931_p9 = scmp.ne.s32.totalorder %s2296_s16, 0 }
  0x32   : > { %180 = sbr.rel (%p1931_p9) target bundleno = 1776 (0x6f0), region = 40 }
  0x37   : > { %v193_v0 = vld [vmem:[%s2743_s0 + $0x8] sm:$0x1f]  ;;  %vm228_vm0 = vcmask 1044480   ;;  %v192_v1 = vld [vmem:[%s2743_s0] sm:$0x1f]  ;;  %v2253_v2 = vmov 0.0  }
  0x38   : > { %1932 = vmatprep.subr.msk.mxu0 %vm228_vm0, %v193_v0  ;;  %299 = vmatprep.mubr.f32.mxu0 %v2253_v2  ;;  %v2374_v3 = vld [vmem:[%s2744_s1] sm:$0xff]  ;;  %vm194_vm1 = vcmask 39936   ;;  %v2383_v4 = vld [vmem:[%s2744_s1 + $0x8] sm:$0xff]  ;;  %v2391_v5 = vld [vmem:[%s2744_s1 + $0x10] sm:$0xff]  ;;  %vm466_vm2 = vcmask 130048  }
  0x39   : > { %1933 = vmatpush1.msk.msra.mxu0 %vm228_vm0, %v192_v1  ;;  %v2399_v6 = vld [vmem:[%s2744_s1 + $0x18] sm:$0xff]  ;;  %v2407_v7 = vld [vmem:[%s2744_s1 + $0x20] sm:$0xff]  ;;  %v2415_v8 = vld [vmem:[%s2744_s1 + $0x28] sm:$0xff] }
  0x3a   : > { %1934 = vmatmul.mubr.msk.f32.vlgmr.msra.gmra.mxu0 %vm194_vm1, %v2374_v3  ;;  %v2423_v9 = vld [vmem:[%s2744_s1 + $0x30] sm:$0xff]  ;;  %v2431_v10 = vld [vmem:[%s2744_s1 + $0x38] sm:$0xff]  ;;  %v2439_v11 = vld [vmem:[%s2744_s1 + $0x40] sm:$0xff] }
  0x3b   : > { %305 = vmatprep.mubr.f32.mxu0 %v2253_v2  ;;  %v2447_v12 = vld [vmem:[%s2744_s1 + $0x48] sm:$0xff]  ;;  %v2455_v13 = vld [vmem:[%s2744_s1 + $0x50] sm:$0xff]  ;;  %v1951_v1 = vld [vmem:[%s2743_s0 + $0x18] sm:$0x1f] }
  0x3e   : > { %1935 = vmatmul.mubr.msk.f32.gmra.mxu0 %vm194_vm1, %v2383_v4 }
  0x3f   : > { %311 = vmatprep.mubr.f32.mxu0 %v2253_v2 }
  0x42   : > { %1936 = vmatmul.mubr.msk.f32.gmra.mxu0 %vm194_vm1, %v2391_v5 }
  0x43   : > { %317 = vmatprep.mubr.f32.mxu0 %v2253_v2 }
  0x46   : > { %1937 = vmatmul.mubr.msk.f32.gmra.mxu0 %vm194_vm1, %v2399_v6 }
  0x47   : > { %323 = vmatprep.mubr.f32.mxu0 %v2253_v2 }
  0x4a   : > { %1938 = vmatmul.mubr.msk.f32.gmra.mxu0 %vm194_vm1, %v2407_v7 }
  0x4b   : > { %329 = vmatprep.mubr.f32.mxu0 %v2253_v2 }
  0x4e   : > { %1939 = vmatmul.mubr.msk.f32.gmra.mxu0 %vm194_vm1, %v2415_v8 }
  0x4f   : > { %335 = vmatprep.mubr.f32.mxu0 %v2253_v2 }
  0x52   : > { %1940 = vmatmul.mubr.msk.f32.gmra.mxu0 %vm194_vm1, %v2423_v9 }
  0x53   : > { %341 = vmatprep.mubr.f32.mxu0 %v2253_v2 }
  0x56   : > { %1941 = vmatmul.mubr.msk.f32.gmra.mxu0 %vm194_vm1, %v2431_v10 }
  0x57   : > { %347 = vmatprep.mubr.f32.mxu0 %v2253_v2 }
  0x5a   : > { %1942 = vmatmul.mubr.msk.f32.gmra.mxu0 %vm194_vm1, %v2439_v11 }
  0x5b   : > { %353 = vmatprep.mubr.f32.mxu0 %v2253_v2 }
  0x5e   : > { %1943 = vmatmul.mubr.msk.f32.gmra.mxu0 %vm194_vm1, %v2447_v12 }
  0x5f   : > { %359 = vmatprep.mubr.f32.mxu0 %v2253_v2 }
  0x62   : > { %1944 = vmatmul.mubr.msk.f32.gmra.mxu0 %vm194_vm1, %v2455_v13 }
  0xfa   : > { %v2459_v14 = vpop.f32.mrf.mxu0 }
  0xfb   : > { %771 = vst [vmem:[#allocation4] sm:$0xff] %v2459_v14 }
  0xfc   : > { %v2462_v15 = vpop.f32.mrf.mxu0 }
  0xfd   : > { %772 = vst [vmem:[#allocation4 + $0x8] sm:$0xff] %v2462_v15 }
  0xfe   : > { %v2465_v16 = vpop.f32.mrf.mxu0 }
  0xff   : > { %773 = vst [vmem:[#allocation4 + $0x10] sm:$0xff] %v2465_v16 }
 0x100   : > { %v2468_v17 = vpop.f32.mrf.mxu0 }
 0x101   : > { %774 = vst [vmem:[#allocation4 + $0x18] sm:$0xff] %v2468_v17 }
 0x102   : > { %v2471_v18 = vpop.f32.mrf.mxu0 }
 0x103   : > { %775 = vst [vmem:[#allocation4 + $0x20] sm:$0xff] %v2471_v18 }
 0x104   : > { %v2474_v19 = vpop.f32.mrf.mxu0 }
 0x105   : > { %776 = vst [vmem:[#allocation4 + $0x28] sm:$0xff] %v2474_v19 }
 0x106   : > { %v2477_v20 = vpop.f32.mrf.mxu0 }
 0x107   : > { %777 = vst [vmem:[#allocation4 + $0x30] sm:$0xff] %v2477_v20 }
 0x108   : > { %v2480_v21 = vpop.f32.mrf.mxu0 }
 0x109   : > { %778 = vst [vmem:[#allocation4 + $0x38] sm:$0xff] %v2480_v21 }
 0x10a   : > { %v2483_v22 = vpop.f32.mrf.mxu0 }
 0x10b   : > { %779 = vst [vmem:[#allocation4 + $0x40] sm:$0xff] %v2483_v22 }
 0x10c   : > { %v2486_v23 = vpop.f32.mrf.mxu0 }
 0x10d   : > { %780 = vst [vmem:[#allocation4 + $0x48] sm:$0xff] %v2486_v23 }
 0x10e   : > { %v2489_v24 = vpop.f32.mrf.mxu0 }
 0x10f   : > { %781 = vst [vmem:[#allocation4 + $0x50] sm:$0xff] %v2489_v24 }
 0x110   : > { %v2492_v25 = vpop.f32.mrf.mxu0 }
 0x111   : > { %782 = vst [vmem:[#allocation4 + $0x58] sm:$0xff] %v2492_v25 }
 0x112   : > { %v2495_v26 = vpop.f32.mrf.mxu0 }
 0x113   : > { %783 = vst [vmem:[#allocation4 + $0x60] sm:$0xff] %v2495_v26 }
 0x114   : > { %v2498_v27 = vpop.f32.mrf.mxu0 }
 0x115   : > { %784 = vst [vmem:[#allocation4 + $0x68] sm:$0xff] %v2498_v27 }
 0x116   : > { %v2501_v28 = vpop.f32.mrf.mxu0 }
 0x117   : > { %785 = vst [vmem:[#allocation4 + $0x70] sm:$0xff] %v2501_v28 }
 0x118   : > { %v2504_v29 = vpop.f32.mrf.mxu0 }
 0x119   : > { %786 = vst [vmem:[#allocation4 + $0x78] sm:$0xff] %v2504_v29 }
 0x11a   : > { %v349_v30 = vpop.f32.mrf.mxu0 }
 0x11c   : > { %v351_v31 = vpop.f32.mrf.mxu0 }
 0x11d   : > { %v366_v35 = vmax.f32 %v349_v30, %v351_v31 }
 0x11e   : > { %v355_v32 = vpop.f32.mrf.mxu0 }
 0x120   : > { %v357_v33 = vpop.f32.mrf.mxu0 }
 0x121   : > { %v369_v34 = vmax.f32 %v355_v32, %v357_v33 }
 0x122   : > { %v361_v52 = vpop.f32.mrf.mxu0 }
 0x123   : > { %370 = vmax.xlane.f32.xlu0 %v369_v34 }
 0x124   : > { %v363_v53 = vpop.f32.mrf.mxu0 }
 0x125   : > { %v2026_v54 = vpack.c.bf16 %v363_v53, %v361_v52  ;;  %460 = vmatprep.mubr.f32.mxu1 %v363_v53 }
 0x127   : > { %367 = vmax.xlane.f32.xlu0 %v366_v35  ;;  %770 = vst [vmem:[#allocation3 + $0x8] sm:$0xff] %v2026_v54 }
 0x1ac   : > { %v371_v36 = vpop.xlane.xlu0 %370 }
 0x1ad   : > { %v374_v37 = vsub.f32 %v355_v32, %v371_v36  ;;  %v375_v38 = vsub.f32 %v357_v33, %v371_v36 }
 0x1af   : > { %v380_v39 = vmul.f32 1.442695, %v374_v37  ;;  %v382_v40 = vmul.f32 1.442695, %v375_v38 }
 0x1b0   : > { %v368_v41 = vpop.xlane.xlu0 %367 }
 0x1b1   : > { %2083 = vpow2.f32 %v380_v39  ;;  %v372_v42 = vsub.f32 %v349_v30, %v368_v41  ;;  %v373_v43 = vsub.f32 %v351_v31, %v368_v41 }
 0x1b2   : > { %2085 = vpow2.f32 %v382_v40 }
 0x1b3   : > { %v376_v44 = vmul.f32 1.442695, %v372_v42  ;;  %v378_v45 = vmul.f32 1.442695, %v373_v43 }
 0x1b5   : > { %2087 = vpow2.f32 %v376_v44 }
 0x1b6   : > { %2089 = vpow2.f32 %v378_v45 }
 0x1be   : > { %v2084_v46 = vpop.eup %2083 }
 0x1bf   : > { %v2086_v47 = vpop.eup %2085 }
 0x1c0   : > { %v387_v48 = vadd.f32 %v2086_v47, %v2084_v46 }
 0x1c2   : > { %v2088_v49 = vpop.eup %2087  ;;  %388 = vadd.xlane.f32.xlu1 %v387_v48 }
 0x1c3   : > { %v2090_v50 = vpop.eup %2089 }
 0x1c4   : > { %v384_v51 = vadd.f32 %v2090_v50, %v2088_v49 }
 0x1c6   : > { %385 = vadd.xlane.f32.xlu1 %v384_v51 }
 0x24b   : > { %v389_v55 = vpop.xlane.xlu1 %388 }
 0x24c   : > { %2091 = vrcp.f32 %v389_v55 }
 0x24f   : > { %v386_v56 = vpop.xlane.xlu1 %385 }
 0x250   : > { %2093 = vrcp.f32 %v386_v56 }
 0x259   : > { %v2092_v57 = vpop.eup %2091 }
 0x25a   : > { %v395_v58 = vmul.f32 %v2092_v57, %v2086_v47  ;;  %v394_v59 = vmul.f32 %v2092_v57, %v2084_v46 }
 0x25c   : > { %424 = vmatprep.subr.mxu1 %v395_v58 }
 0x25d   : > { %v2094_v60 = vpop.eup %2093  ;;  %425 = vmatpush1.xpose.msra.mxu1 %v394_v59 }
 0x25e   : > { %v393_v61 = vmul.f32 %v2094_v60, %v2090_v50  ;;  %v392_v62 = vmul.f32 %v2094_v60, %v2088_v49 }
 0x260   : > { %426 = vmatprep.subr.mxu1 %v393_v61 }
 0x261   : > { %427 = vmatpush1.xpose.msra.mxu1 %v392_v62 }
 0x262   : > { %498 = vmatprep.subr.mxu1 %v2468_v17 }
 0x264   : > { %461 = vmatmul.mubr.f32.vlgmr.msra.gmra.mxu1 %v361_v52 }
 0x265   : > { %499 = vmatpush1.msra.mxu1 %v2465_v16  ;;  %534 = vmatprep.mubr.f32.mxu1 %v2253_v2 }
 0x266   : > { %500 = vmatprep.subr.mxu1 %v2462_v15 }
 0x267   : > { %501 = vmatpush1.msra.mxu1 %v2459_v14  ;;  %v1950_v14 = vld [vmem:[%s2743_s0 + $0x10] sm:$0x1f] }
 0x268   : > { %571 = vmatprep.subr.mxu1 %v2480_v21 }
 0x324   : > { %v462_v63 = vpop.f32.mrf.mxu1 }
 0x325   : > { %1945 = vmatmul.mubr.msk.f32.vlgmr.msra.gmra.mxu1 %vm466_vm2, %v462_v63 }
 0x326   : > { %572 = vmatpush1.msra.mxu1 %v2477_v20  ;;  %v464_v0 = vpop.f32.mrf.mxu1  ;;  %607 = vmatprep.mubr.f32.mxu1 %v2253_v2 }
 0x327   : > { %573 = vmatprep.subr.mxu1 %v2474_v19 }
 0x328   : > { %574 = vmatpush1.msra.mxu1 %v2471_v18 }
 0x329   : > { %644 = vmatprep.subr.mxu1 %v2492_v25  ;;  %1946 = vmatmul.mubr.msk.f32.vlgmr.msra.gmra.mxu1 %vm466_vm2, %v462_v63 }
 0x32a   : > { %645 = vmatpush1.msra.mxu1 %v2489_v24  ;;  %680 = vmatprep.mubr.f32.mxu1 %v2253_v2 }
 0x32b   : > { %646 = vmatprep.subr.mxu1 %v2486_v23 }
 0x32c   : > { %647 = vmatpush1.msra.mxu1 %v2483_v22 }
 0x32d   : > { %717 = vmatprep.subr.mxu1 %v2504_v29  ;;  %1947 = vmatmul.mubr.msk.f32.vlgmr.msra.gmra.mxu1 %vm466_vm2, %v462_v63 }
 0x32e   : > { %718 = vmatpush1.msra.mxu1 %v2501_v28  ;;  %753 = vmatprep.mubr.f32.mxu1 %v2253_v2 }
 0x32f   : > { %719 = vmatprep.subr.mxu1 %v2498_v27 }
 0x330   : > { %720 = vmatpush1.msra.mxu1 %v2495_v26 }
 0x331   : > { %1948 = vmatmul.mubr.msk.f32.vlgmr.msra.gmra.mxu1 %vm466_vm2, %v462_v63  ;;  %1952 = vmatprep.subr.msk.mxu1 %vm228_vm0, %v1951_v1 }
 0x332   : > { %1953 = vmatpush1.msk.msra.mxu1 %vm228_vm0, %v1950_v14  ;;  %860 = vmatprep.mubr.f32.mxu1 %v2253_v2 }
 0x335   : > { %1954 = vmatmul.mubr.msk.f32.vlgmr.msra.gmra.mxu1 %vm194_vm1, %v2374_v3 }
 0x336   : > { %866 = vmatprep.mubr.f32.mxu1 %v2253_v2 }
 0x339   : > { %1955 = vmatmul.mubr.msk.f32.gmra.mxu1 %vm194_vm1, %v2383_v4 }
 0x33a   : > { %872 = vmatprep.mubr.f32.mxu1 %v2253_v2 }
 0x33d   : > { %1956 = vmatmul.mubr.msk.f32.gmra.mxu1 %vm194_vm1, %v2391_v5 }
 0x33e   : > { %878 = vmatprep.mubr.f32.mxu1 %v2253_v2 }
 0x341   : > { %1957 = vmatmul.mubr.msk.f32.gmra.mxu1 %vm194_vm1, %v2399_v6 }
 0x342   : > { %884 = vmatprep.mubr.f32.mxu1 %v2253_v2 }
 0x345   : > { %1958 = vmatmul.mubr.msk.f32.gmra.mxu1 %vm194_vm1, %v2407_v7 }
 0x346   : > { %890 = vmatprep.mubr.f32.mxu1 %v2253_v2 }
 0x349   : > { %1959 = vmatmul.mubr.msk.f32.gmra.mxu1 %vm194_vm1, %v2415_v8 }
 0x34a   : > { %896 = vmatprep.mubr.f32.mxu1 %v2253_v2 }
 0x34d   : > { %1960 = vmatmul.mubr.msk.f32.gmra.mxu1 %vm194_vm1, %v2423_v9 }
 0x34e   : > { %902 = vmatprep.mubr.f32.mxu1 %v2253_v2 }
 0x351   : > { %1961 = vmatmul.mubr.msk.f32.gmra.mxu1 %vm194_vm1, %v2431_v10 }
 0x352   : > { %908 = vmatprep.mubr.f32.mxu1 %v2253_v2 }
 0x355   : > { %1962 = vmatmul.mubr.msk.f32.gmra.mxu1 %vm194_vm1, %v2439_v11 }
 0x356   : > { %914 = vmatprep.mubr.f32.mxu1 %v2253_v2 }
 0x359   : > { %1963 = vmatmul.mubr.msk.f32.gmra.mxu1 %vm194_vm1, %v2447_v12 }
 0x35a   : > { %920 = vmatprep.mubr.f32.mxu1 %v2253_v2 }
 0x35d   : > { %1964 = vmatmul.mubr.msk.f32.gmra.mxu1 %vm194_vm1, %v2455_v13 }
 0x3e5   : > { %v536_v3 = vpop.f32.mrf.mxu1 }
 0x3e6   : > { %541 = vst [vmem:[#allocation2 + $0x30] sm:$0xff] %v536_v3 }
 0x3e7   : > { %v538_v4 = vpop.f32.mrf.mxu1 }
 0x3e8   : > { %542 = vst [vmem:[#allocation2] sm:$0xff] %v538_v4 }
 0x3e9   : > { %v609_v5 = vpop.f32.mrf.mxu1 }
 0x3ea   : > { %614 = vst [vmem:[#allocation2 + $0x58] sm:$0xff] %v609_v5 }
 0x3eb   : > { %v611_v6 = vpop.f32.mrf.mxu1 }
 0x3ec   : > { %615 = vst [vmem:[#allocation2 + $0x18] sm:$0xff] %v611_v6 }
 0x3ed   : > { %v682_v7 = vpop.f32.mrf.mxu1 }
 0x3ee   : > { %687 = vst [vmem:[#allocation2 + $0x50] sm:$0xff] %v682_v7 }
 0x3ef   : > { %v684_v8 = vpop.f32.mrf.mxu1 }
 0x3f0   : > { %688 = vst [vmem:[#allocation2 + $0x68] sm:$0xff] %v684_v8 }
 0x3f1   : > { %v755_v9 = vpop.f32.mrf.mxu1 }
 0x3f2   : > { %760 = vst [vmem:[#allocation2 + $0x8] sm:$0xff] %v755_v9 }
 0x3f3   : > { %v757_v10 = vpop.f32.mrf.mxu1 }
 0x3f4   : > { %761 = vst [vmem:[#allocation2 + $0x48] sm:$0xff] %v757_v10 }
 0x3f5   : > { %v2572_v11 = vpop.f32.mrf.mxu1 }
 0x3f6   : > { %1333 = vst [vmem:[#allocation4 + $0x80] sm:$0xff] %v2572_v11 }
 0x3f7   : > { %v2575_v12 = vpop.f32.mrf.mxu1 }
 0x3f8   : > { %1334 = vst [vmem:[#allocation4 + $0x88] sm:$0xff] %v2575_v12 }
 0x3f9   : > { %v2578_v13 = vpop.f32.mrf.mxu1 }
 0x3fa   : > { %1335 = vst [vmem:[#allocation4 + $0x90] sm:$0xff] %v2578_v13 }
 0x3fb   : > { %v2581_v15 = vpop.f32.mrf.mxu1 }
 0x3fc   : > { %1336 = vst [vmem:[#allocation4 + $0x98] sm:$0xff] %v2581_v15 }
 0x3fd   : > { %v2584_v16 = vpop.f32.mrf.mxu1 }
 0x3fe   : > { %1337 = vst [vmem:[#allocation4 + $0xa0] sm:$0xff] %v2584_v16 }
 0x3ff   : > { %v2587_v17 = vpop.f32.mrf.mxu1 }
 0x400   : > { %1338 = vst [vmem:[#allocation4 + $0xa8] sm:$0xff] %v2587_v17 }
 0x401   : > { %v2590_v18 = vpop.f32.mrf.mxu1 }
 0x402   : > { %1339 = vst [vmem:[#allocation4 + $0xb0] sm:$0xff] %v2590_v18 }
 0x403   : > { %v2593_v19 = vpop.f32.mrf.mxu1 }
 0x404   : > { %1340 = vst [vmem:[#allocation4 + $0xb8] sm:$0xff] %v2593_v19 }
 0x405   : > { %v2596_v20 = vpop.f32.mrf.mxu1 }
 0x406   : > { %1341 = vst [vmem:[#allocation4 + $0xc0] sm:$0xff] %v2596_v20 }
 0x407   : > { %v2599_v21 = vpop.f32.mrf.mxu1 }
 0x408   : > { %1342 = vst [vmem:[#allocation4 + $0xc8] sm:$0xff] %v2599_v21 }
 0x409   : > { %v2602_v22 = vpop.f32.mrf.mxu1 }
 0x40a   : > { %1343 = vst [vmem:[#allocation4 + $0xd0] sm:$0xff] %v2602_v22 }
 0x40b   : > { %v2605_v23 = vpop.f32.mrf.mxu1 }
 0x40c   : > { %1344 = vst [vmem:[#allocation4 + $0xd8] sm:$0xff] %v2605_v23 }
 0x40d   : > { %v2608_v24 = vpop.f32.mrf.mxu1 }
 0x40e   : > { %1345 = vst [vmem:[#allocation4 + $0xe0] sm:$0xff] %v2608_v24 }
 0x40f   : > { %v2611_v25 = vpop.f32.mrf.mxu1 }
 0x410   : > { %1346 = vst [vmem:[#allocation4 + $0xe8] sm:$0xff] %v2611_v25 }
 0x411   : > { %v2614_v26 = vpop.f32.mrf.mxu1 }
 0x412   : > { %1347 = vst [vmem:[#allocation4 + $0xf0] sm:$0xff] %v2614_v26 }
 0x413   : > { %v2617_v27 = vpop.f32.mrf.mxu1 }
 0x414   : > { %1348 = vst [vmem:[#allocation4 + $0xf8] sm:$0xff] %v2617_v27 }
 0x415   : > { %v910_v28 = vpop.f32.mrf.mxu1 }
 0x417   : > { %v912_v29 = vpop.f32.mrf.mxu1 }
 0x418   : > { %v927_v30 = vmax.f32 %v910_v28, %v912_v29 }
 0x419   : > { %v916_v31 = vpop.f32.mrf.mxu1 }
 0x41a   : > { %928 = vmax.xlane.f32.xlu1 %v927_v30 }
 0x41b   : > { %v918_v32 = vpop.f32.mrf.mxu1 }
 0x41c   : > { %v930_v33 = vmax.f32 %v916_v31, %v918_v32 }
 0x41d   : > { %v922_v50 = vpop.f32.mrf.mxu1 }
 0x41e   : > { %931 = vmax.xlane.f32.xlu0 %v930_v33 }
 0x41f   : > { %v924_v51 = vpop.f32.mrf.mxu1 }
 0x420   : > { %v2027_v52 = vpack.c.bf16 %v924_v51, %v922_v50  ;;  %1021 = vmatprep.mubr.f32.mxu0 %v924_v51 }
 0x422   : > { %1331 = vst [vmem:[#allocation3] sm:$0xff] %v2027_v52 }
 0x4a3   : > { %v929_v34 = vpop.xlane.xlu1 %928 }
 0x4a4   : > { %v933_v35 = vsub.f32 %v910_v28, %v929_v34  ;;  %v934_v36 = vsub.f32 %v912_v29, %v929_v34 }
 0x4a6   : > { %v937_v37 = vmul.f32 1.442695, %v933_v35  ;;  %v939_v38 = vmul.f32 1.442695, %v934_v36 }
 0x4a7   : > { %v932_v39 = vpop.xlane.xlu0 %931 }
 0x4a8   : > { %2095 = vpow2.f32 %v937_v37  ;;  %v935_v40 = vsub.f32 %v916_v31, %v932_v39  ;;  %v936_v41 = vsub.f32 %v918_v32, %v932_v39 }
 0x4a9   : > { %2097 = vpow2.f32 %v939_v38 }
 0x4aa   : > { %v941_v42 = vmul.f32 1.442695, %v935_v40  ;;  %v943_v43 = vmul.f32 1.442695, %v936_v41 }
 0x4ac   : > { %2099 = vpow2.f32 %v941_v42 }
 0x4ad   : > { %2101 = vpow2.f32 %v943_v43 }
 0x4b5   : > { %v2096_v44 = vpop.eup %2095 }
 0x4b6   : > { %v2098_v45 = vpop.eup %2097 }
 0x4b7   : > { %v945_v46 = vadd.f32 %v2098_v45, %v2096_v44 }
 0x4b9   : > { %v2100_v47 = vpop.eup %2099  ;;  %946 = vadd.xlane.f32.xlu1 %v945_v46 }
 0x4ba   : > { %v2102_v48 = vpop.eup %2101 }
 0x4bb   : > { %v948_v49 = vadd.f32 %v2102_v48, %v2100_v47 }
 0x4bd   : > { %949 = vadd.xlane.f32.xlu0 %v948_v49 }
 0x542   : > { %v947_v53 = vpop.xlane.xlu1 %946 }
 0x543   : > { %2103 = vrcp.f32 %v947_v53 }
 0x546   : > { %v950_v54 = vpop.xlane.xlu0 %949 }
 0x547   : > { %2105 = vrcp.f32 %v950_v54 }
 0x550   : > { %v2104_v55 = vpop.eup %2103 }
 0x551   : > { %v954_v59 = vmul.f32 %v2104_v55, %v2098_v45  ;;  %v953_v60 = vmul.f32 %v2104_v55, %v2096_v44 }
 0x554   : > { %v2106_v56 = vpop.eup %2105 }
 0x555   : > { %v956_v57 = vmul.f32 %v2106_v56, %v2102_v48  ;;  %v955_v58 = vmul.f32 %v2106_v56, %v2100_v47 }
 0x557   : > { %985 = vmatprep.subr.mxu0 %v956_v57 }
 0x558   : > { %986 = vmatpush1.xpose.msra.mxu0 %v955_v58 }
 0x559   : > { %987 = vmatprep.subr.mxu0 %v954_v59 }
 0x55c   : > { %988 = vmatpush1.xpose.msra.mxu0 %v953_v60 }
 0x55d   : > { %1058 = vmatprep.subr.mxu0 %v2581_v15 }
 0x55f   : > { %1022 = vmatmul.mubr.f32.vlgmr.msra.gmra.mxu0 %v922_v50 }
 0x560   : > { %1059 = vmatpush1.msra.mxu0 %v2578_v13  ;;  %1094 = vmatprep.mubr.f32.mxu0 %v2253_v2 }
 0x561   : > { %1060 = vmatprep.subr.mxu0 %v2575_v12 }
 0x562   : > { %1061 = vmatpush1.msra.mxu0 %v2572_v11 }
 0x563   : > { %1132 = vmatprep.subr.mxu0 %v2593_v19 }
 0x61f   : > { %v1023_v61 = vpop.f32.mrf.mxu0 }
 0x620   : > { %1965 = vmatmul.mubr.msk.f32.vlgmr.msra.gmra.mxu0 %vm466_vm2, %v1023_v61 }
 0x621   : > { %1133 = vmatpush1.msra.mxu0 %v2590_v18  ;;  %1168 = vmatprep.mubr.f32.mxu0 %v2253_v2  ;;  %v1025_v62 = vpop.f32.mrf.mxu0 }
 0x622   : > { %1134 = vmatprep.subr.mxu0 %v2587_v17 }
 0x623   : > { %1135 = vmatpush1.msra.mxu0 %v2584_v16 }
 0x624   : > { %1205 = vmatprep.subr.mxu0 %v2605_v23  ;;  %1966 = vmatmul.mubr.msk.f32.vlgmr.msra.gmra.mxu0 %vm466_vm2, %v1023_v61 }
 0x625   : > { %1206 = vmatpush1.msra.mxu0 %v2602_v22  ;;  %1241 = vmatprep.mubr.f32.mxu0 %v2253_v2 }
 0x626   : > { %1207 = vmatprep.subr.mxu0 %v2599_v21 }
 0x627   : > { %1208 = vmatpush1.msra.mxu0 %v2596_v20 }
 0x628   : > { %1278 = vmatprep.subr.mxu0 %v2617_v27  ;;  %1967 = vmatmul.mubr.msk.f32.vlgmr.msra.gmra.mxu0 %vm466_vm2, %v1023_v61 }
 0x629   : > { %1279 = vmatpush1.msra.mxu0 %v2614_v26  ;;  %1314 = vmatprep.mubr.f32.mxu0 %v2253_v2 }
 0x62a   : > { %1280 = vmatprep.subr.mxu0 %v2611_v25 }
 0x62b   : > { %1281 = vmatpush1.msra.mxu0 %v2608_v24 }
 0x62c   : > { %1968 = vmatmul.mubr.msk.f32.vlgmr.msra.gmra.mxu0 %vm466_vm2, %v1023_v61 }
 0x6e0   : > { %v1096_v63 = vpop.f32.mrf.mxu0 }
 0x6e1   : > { %1102 = vst [vmem:[#allocation2 + $0x40] sm:$0xff] %v1096_v63 }
 0x6e2   : > { %v1098_v0 = vpop.f32.mrf.mxu0 }
 0x6e3   : > { %1103 = vst [vmem:[#allocation2 + $0x20] sm:$0xff] %v1098_v0 }
 0x6e4   : > { %v1170_v1 = vpop.f32.mrf.mxu0 }
 0x6e5   : > { %1175 = vst [vmem:[#allocation2 + $0x10] sm:$0xff] %v1170_v1 }
 0x6e6   : > { %v1172_v14 = vpop.f32.mrf.mxu0 }
 0x6e7   : > { %1176 = vst [vmem:[#allocation2 + $0x38] sm:$0xff] %v1172_v14 }
 0x6e8   : > { %v1243_v3 = vpop.f32.mrf.mxu0 }
 0x6e9   : > { %1248 = vst [vmem:[#allocation2 + $0x60] sm:$0xff] %v1243_v3 }
 0x6ea   : > { %v1245_v4 = vpop.f32.mrf.mxu0 }
 0x6eb   : > { %1249 = vst [vmem:[#allocation2 + $0x70] sm:$0xff] %v1245_v4 }
 0x6ec   : > { %v1316_v5 = vpop.f32.mrf.mxu0 }
 0x6ed   : > { %1321 = vst [vmem:[#allocation2 + $0x78] sm:$0xff] %v1316_v5 }
 0x6ee   : > { %v1318_v2 = vpop.f32.mrf.mxu0 }
 0x6ef   : > { %1322 = vst [vmem:[#allocation2 + $0x28] sm:$0xff] %v1318_v2 }
 0x6f0 PF: > { %v2107_v6 = vld [vmem:[%s2356_s28 + $0x74] ss:$8 sps:$4 sm:$0xff]   ;;  %v2109_v7 = vld [vmem:[%s2356_s28 + $0x70] ss:$8 sps:$4 sm:$0xff]   ;;  %v2110_v8 = vld [vmem:[%s2356_s28 + $0x64] ss:$8 sps:$4 sm:$0xff]   ;;  %v1606_v41 = vlaneseq }
 0x6f1   : > { %1553 = vmatprep.subr.bf16.mxu0 %v2107_v6  ;;  %v2112_v9 = vld [vmem:[%s2356_s28 + $0x60] ss:$8 sps:$4 sm:$0xff]   ;;  %v2113_v10 = vld [vmem:[%s2356_s28 + $0x54] ss:$8 sps:$4 sm:$0xff]   ;;  %v2115_v11 = vld [vmem:[%s2356_s28 + $0x50] ss:$8 sps:$4 sm:$0xff]  }
 0x6f2   : > { %1554 = vmatpush1.bf16.msra.mxu0 %v2109_v7  ;;  %v2116_v12 = vld [vmem:[%s2356_s28 + $0x44] ss:$8 sps:$4 sm:$0xff]   ;;  %v2118_v13 = vld [vmem:[%s2356_s28 + $0x40] ss:$8 sps:$4 sm:$0xff]   ;;  %v2119_v15 = vld [vmem:[%s2356_s28 + $0x34] ss:$8 sps:$4 sm:$0xff]  }
 0x6f3   : > { %1555 = vmatprep.subr.bf16.mxu0 %v2110_v8  ;;  %v2121_v16 = vld [vmem:[%s2356_s28 + $0x30] ss:$8 sps:$4 sm:$0xff]   ;;  %v2122_v17 = vld [vmem:[%s2356_s28 + $0x24] ss:$8 sps:$4 sm:$0xff]   ;;  %v2124_v18 = vld [vmem:[%s2356_s28 + $0x20] ss:$8 sps:$4 sm:$0xff]  }
 0x6f4   : > { %v2125_v19 = vld [vmem:[%s2356_s28 + $0x14] ss:$8 sps:$4 sm:$0xff]   ;;  %v2127_v21 = vld [vmem:[%s2356_s28 + $0x10] ss:$8 sps:$4 sm:$0xff]   ;;  %v2128_v22 = vld [vmem:[%s2356_s28 + $0x4] ss:$8 sps:$4 sm:$0xff]  }
 0x6f5   : > { %v2157_v20 = vld [vmem:[#allocation3 + $0xc] ss:$-8 sps:$4 sm:$0xff]   ;;  %v2130_v23 = vld [vmem:[%s2356_s28] ss:$8 sps:$4 sm:$0xff]   ;;  %v2133_v25 = vld [vmem:[%s2356_s28 + $0xf0] ss:$8 sps:$4 sm:$0xff]  }
 0x6f6   : > { %1556 = vmatpush1.bf16.msra.mxu0 %v2112_v9  ;;  %1585 = vmatprep.mubr.bf16.mxu0 %v2157_v20  ;;  %v2131_v24 = vld [vmem:[%s2356_s28 + $0xf4] ss:$8 sps:$4 sm:$0xff]   ;;  %v2134_v26 = vld [vmem:[%s2356_s28 + $0xe4] ss:$8 sps:$4 sm:$0xff]   ;;  %v2136_v27 = vld [vmem:[%s2356_s28 + $0xe0] ss:$8 sps:$4 sm:$0xff]  }
 0x6f7   : > { %1557 = vmatprep.subr.bf16.mxu0 %v2113_v10  ;;  %v2137_v28 = vld [vmem:[%s2356_s28 + $0xd4] ss:$8 sps:$4 sm:$0xff]   ;;  %v2139_v29 = vld [vmem:[%s2356_s28 + $0xd0] ss:$8 sps:$4 sm:$0xff]   ;;  %v2140_v30 = vld [vmem:[%s2356_s28 + $0xc4] ss:$8 sps:$4 sm:$0xff]  }
 0x6f8   : > { %v2142_v31 = vld [vmem:[%s2356_s28 + $0xc0] ss:$8 sps:$4 sm:$0xff]   ;;  %v2143_v32 = vld [vmem:[%s2356_s28 + $0xb4] ss:$8 sps:$4 sm:$0xff]   ;;  %v2145_v33 = vld [vmem:[%s2356_s28 + $0xb0] ss:$8 sps:$4 sm:$0xff]  }
 0x6f9   : > { %v2146_v34 = vld [vmem:[%s2356_s28 + $0xa4] ss:$8 sps:$4 sm:$0xff]   ;;  %v2148_v35 = vld [vmem:[%s2356_s28 + $0xa0] ss:$8 sps:$4 sm:$0xff]   ;;  %v2149_v36 = vld [vmem:[%s2356_s28 + $0x94] ss:$8 sps:$4 sm:$0xff]  }
 0x6fa   : > { %1558 = vmatpush1.bf16.msra.mxu0 %v2115_v11  ;;  %v2151_v37 = vld [vmem:[%s2356_s28 + $0x90] ss:$8 sps:$4 sm:$0xff]   ;;  %v2152_v38 = vld [vmem:[%s2356_s28 + $0x84] ss:$8 sps:$4 sm:$0xff]   ;;  %v2154_v39 = vld [vmem:[%s2356_s28 + $0x80] ss:$8 sps:$4 sm:$0xff]  }
 0x6fb   : > { %1559 = vmatprep.subr.bf16.mxu0 %v2116_v12  ;;  %v2155_v40 = vld [vmem:[#allocation3 + $0x8] ss:$-8 sps:$4 sm:$0xff]   ;;  %s1618_s8 = sadd.s32 16, %s2296_s16  ;;  %s1641_s9 = sadd.s32 32, %s2296_s16  ;;  %v1607_v42 = vshrl.u32 %v1606_v41, 7  ;;  %v1687_v57 = vld [vmem:[#allocation2 + $0x30] sm:$0xff] }
 0x6fc   : > { %s1596_s10 = sshra.s32 %s2296_s16, 3  ;;  %s1664_s11 = sadd.s32 48, %s2296_s16  ;;  %v1689_v63 = vld [vmem:[#allocation2 + $0x58] sm:$0xff]  ;;  %v1691_v0 = vld [vmem:[#allocation2 + $0x50] sm:$0xff]  ;;  %v1693_v1 = vld [vmem:[#allocation2 + $0x8] sm:$0xff] }
 0x6fd   : > { %s1619_s12 = sshra.s32 %s1618_s8, 3  ;;  %s1599_s18 = sand.u32 7, %s2296_s16  ;;  %v2681_v43 = vsub.s32 0, %v1607_v42  ;;  %v2683_v48 = vsub.s32 1, %v1607_v42  ;;  %v1688_v10 = vld [vmem:[#allocation2] sm:$0xff]  ;;  %v1690_v11 = vld [vmem:[#allocation2 + $0x18] sm:$0xff] }
 0x6fe   : > { %1560 = vmatpush1.bf16.msra.mxu0 %v2118_v13  ;;  %s1642_s19 = sshra.s32 %s1641_s9, 3  ;;  %s2028_s22 = sshll.u32 %s1596_s10, 4  ;;  %v1777_v41 = vld [vmem:[#allocation2 + $0x20] sm:$0xff] }
 0x6ff   : > { %1561 = vmatprep.subr.bf16.mxu0 %v2119_v15  ;;  %s1665_s23 = sshra.s32 %s1664_s11, 3  ;;  %s1622_s24 = sand.u32 7, %s1618_s8 }
 0x700   : > { %s2029_s25 = sshll.u32 %s1619_s12, 4  ;;  %s1645_s26 = sand.u32 7, %s1641_s9 }
 0x701   : > { %s2030_s27 = sshll.u32 %s1642_s19, 4  ;;  %s1668_s29 = sand.u32 7, %s1664_s11 }
 0x702   : > { %1562 = vmatpush1.bf16.msra.mxu0 %v2121_v16  ;;  %s2031_s28 = sshll.u32 %s1665_s23, 4  ;;  %s1602_s15 = sadd.s32 %s2028_s22, %s1599_s18 }
 0x703   : > { %1563 = vmatprep.subr.bf16.mxu0 %v2122_v17  ;;  %s1625_s30 = sadd.s32 %s2029_s25, %s1622_s24  ;;  %s1648_s4 = sadd.s32 %s2030_s27, %s1645_s26 }
 0x704   : > { %s1671_s21 = sadd.s32 %s2031_s28, %s1668_s29  ;;  %s1603_s5 = scalar_lea.vmem [#allocation4], %s1602_s15 }
 0x705   : > { %v1604_v44 = vld [vmem:[%s1603_s5] ss:$8 sm:$0x3]  ;;  %s1626_s6 = scalar_lea.vmem [#allocation4], %s1625_s30  ;;  %s1649_s7 = scalar_lea.vmem [#allocation4], %s1648_s4 }
 0x706   : > { %1564 = vmatpush1.bf16.msra.mxu0 %v2124_v18  ;;  %v1627_v45 = vld [vmem:[%s1626_s6] ss:$8 sm:$0x3]  ;;  %s1672_s8 = scalar_lea.vmem [#allocation4], %s1671_s21  ;;  %v1609_v51 = vrot.slane %v1604_v44, %v2681_v43  ;;  %v1613_v58 = vrot.slane %v1604_v44, %v2683_v48  ;;  %p2020_p8 = scmp.ne.s32.totalorder %s2296_s16, 15 }
 0x707   : > { %1565 = vmatprep.subr.bf16.mxu0 %v2125_v19  ;;  %v1650_v46 = vld [vmem:[%s1649_s7] ss:$8 sm:$0x3]  ;;  %v1632_v52 = vrot.slane %v1627_v45, %v2681_v43  ;;  %v1636_v59 = vrot.slane %v1627_v45, %v2683_v48 }
 0x708   : > { %v1673_v47 = vld [vmem:[%s1672_s8] ss:$8 sm:$0x3]  ;;  %v1655_v53 = vrot.slane %v1650_v46, %v2681_v43  ;;  %v1659_v60 = vrot.slane %v1650_v46, %v2683_v48  ;;  %v1779_v46 = vld [vmem:[#allocation2 + $0x38] sm:$0xff] }
 0x709   : > { %v2685_v49 = vld [vmem:[%s1603_s5 + $0x80] ss:$8 sm:$0x3]  ;;  %v1678_v54 = vrot.slane %v1673_v47, %v2681_v43  ;;  %v1682_v14 = vrot.slane %v1673_v47, %v2683_v48  ;;  %v1781_v47 = vld [vmem:[#allocation2 + $0x70] sm:$0xff] }
 0x70a   : > { %1566 = vmatpush1.bf16.msra.mxu0 %v2127_v21  ;;  %v2687_v50 = vld [vmem:[%s1626_s6 + $0x80] ss:$8 sm:$0x3]  ;;  %v1718_v61 = vrot.slane %v2685_v49, %v2681_v43  ;;  %v1722_v12 = vrot.slane %v2685_v49, %v2683_v48 }
 0x70b   : > { %1567 = vmatprep.subr.bf16.mxu0 %v2128_v22  ;;  %v2693_v55 = vld [vmem:[%s1649_s7 + $0x80] ss:$8 sm:$0x3]  ;;  %v1734_v3 = vrot.slane %v2687_v50, %v2681_v43  ;;  %v1738_v13 = vrot.slane %v2687_v50, %v2683_v48 }
 0x70c   : > { %v2695_v56 = vld [vmem:[%s1672_s8 + $0x80] ss:$8 sm:$0x3]  ;;  %v1750_v4 = vrot.slane %v2693_v55, %v2681_v43  ;;  %v1754_v15 = vrot.slane %v2693_v55, %v2683_v48 }
 0x70d   : > { %v1766_v5 = vrot.slane %v2695_v56, %v2681_v43  ;;  %v1770_v16 = vrot.slane %v2695_v56, %v2683_v48  ;;  %v1692_v21 = vld [vmem:[#allocation2 + $0x68] sm:$0xff] }
 0x70e   : > { %1568 = vmatpush1.bf16.msra.mxu0 %v2130_v23  ;;  %v1694_v22 = vld [vmem:[#allocation2 + $0x48] sm:$0xff]  ;;  %v1776_v23 = vld [vmem:[#allocation2 + $0x40] sm:$0xff] }
 0x70f   : > { %1569 = vmatprep.subr.bf16.mxu0 %v2131_v24  ;;  %v1783_v48 = vld [vmem:[#allocation2 + $0x28] sm:$0xff] }
 0x712   : > { %1570 = vmatpush2.bf16.msra.mxu0 %v2133_v25 }
 0x713   : > { %1571 = vmatprep.subr.bf16.mxu0 %v2134_v26 }
 0x716   : > { %1572 = vmatpush2.bf16.msra.mxu0 %v2136_v27 }
 0x717   : > { %1573 = vmatprep.subr.bf16.mxu0 %v2137_v28 }
 0x71a   : > { %1574 = vmatpush2.bf16.msra.mxu0 %v2139_v29  ;;  %v1778_v29 = vld [vmem:[#allocation2 + $0x10] sm:$0xff] }
 0x71b   : > { %1575 = vmatprep.subr.bf16.mxu0 %v2140_v30  ;;  %v1780_v30 = vld [vmem:[#allocation2 + $0x60] sm:$0xff] }
 0x71e   : > { %1576 = vmatpush2.bf16.msra.mxu0 %v2142_v31  ;;  %v1782_v31 = vld [vmem:[#allocation2 + $0x78] sm:$0xff] }
 0x71f   : > { %1577 = vmatprep.subr.bf16.mxu0 %v2143_v32 }
 0x722   : > { %1578 = vmatpush2.bf16.msra.mxu0 %v2145_v33 }
 0x723   : > { %1579 = vmatprep.subr.bf16.mxu0 %v2146_v34 }
 0x726   : > { %1580 = vmatpush2.bf16.msra.mxu0 %v2148_v35 }
 0x727   : > { %1581 = vmatprep.subr.bf16.mxu0 %v2149_v36 }
 0x72a   : > { %1582 = vmatpush2.bf16.msra.mxu0 %v2151_v37 }
 0x72b   : > { %1583 = vmatprep.subr.bf16.mxu0 %v2152_v38 }
 0x72e   : > { %1584 = vmatpush2.bf16.msra.mxu0 %v2154_v39 }
 0x731   : > { %1586 = vmatmul.mubr.bf16.vlgmr.msra.gmra.mxu0 %v2155_v40 }
 0x7f1   : > { %v1587_v62 = vpop.f32.mrf.mxu0 }
 0x7f2   : > { %v1616_v2 = vmul.f32 %v1609_v51, %v1587_v62  ;;  %v1639_v6 = vmul.f32 %v1632_v52, %v1587_v62  ;;  %v1662_v7 = vmul.f32 %v1655_v53, %v1587_v62  ;;  %v1685_v8 = vmul.f32 %v1678_v54, %v1587_v62 }
 0x7f3   : > { %v1589_v9 = vpop.f32.mrf.mxu0 }
 0x7f4   : > { %v1695_v17 = vadd.f32 %v1687_v57, %v1616_v2  ;;  %v1697_v18 = vadd.f32 %v1689_v63, %v1639_v6  ;;  %v1699_v19 = vadd.f32 %v1691_v0, %v1662_v7  ;;  %v1701_v20 = vadd.f32 %v1693_v1, %v1685_v8 }
 0x7f5   : > { %v1617_v24 = vmul.f32 %v1613_v58, %v1589_v9  ;;  %v1640_v25 = vmul.f32 %v1636_v59, %v1589_v9  ;;  %v1663_v26 = vmul.f32 %v1659_v60, %v1589_v9  ;;  %v1686_v27 = vmul.f32 %v1682_v14, %v1589_v9  ;;  %v1591_v28 = vpop.f32.mrf.mxu0 }
 0x7f6   : > { %1703 = vst [vmem:[#allocation2 + $0x30] sm:$0xff] %v1695_v17  ;;  %1705 = vst [vmem:[#allocation2 + $0x58] sm:$0xff] %v1697_v18  ;;  %v1725_v32 = vmul.f32 %v1718_v61, %v1591_v28  ;;  %v1741_v33 = vmul.f32 %v1734_v3, %v1591_v28  ;;  %v1757_v34 = vmul.f32 %v1750_v4, %v1591_v28 }
 0x7f7   : > { %1707 = vst [vmem:[#allocation2 + $0x50] sm:$0xff] %v1699_v19  ;;  %1709 = vst [vmem:[#allocation2 + $0x8] sm:$0xff] %v1701_v20  ;;  %v1773_v35 = vmul.f32 %v1766_v5, %v1591_v28  ;;  %v1696_v36 = vadd.f32 %v1688_v10, %v1617_v24  ;;  %v1698_v37 = vadd.f32 %v1690_v11, %v1640_v25  ;;  %v1593_v40 = vpop.f32.mrf.mxu0 }
 0x7f8   : > { %v1700_v38 = vadd.f32 %v1692_v21, %v1663_v26  ;;  %v1702_v39 = vadd.f32 %v1694_v22, %v1686_v27  ;;  %v1784_v42 = vadd.f32 %v1776_v23, %v1725_v32  ;;  %v1786_v43 = vadd.f32 %v1778_v29, %v1741_v33 }
 0x7f9   : > { %v1788_v44 = vadd.f32 %v1780_v30, %v1757_v34  ;;  %v1790_v45 = vadd.f32 %v1782_v31, %v1773_v35  ;;  %1704 = vst [vmem:[#allocation2] sm:$0xff] %v1696_v36  ;;  %1706 = vst [vmem:[#allocation2 + $0x18] sm:$0xff] %v1698_v37  ;;  %v1726_v49 = vmul.f32 %v1722_v12, %v1593_v40 }
 0x7fa   : > { %1708 = vst [vmem:[#allocation2 + $0x68] sm:$0xff] %v1700_v38  ;;  %1710 = vst [vmem:[#allocation2 + $0x48] sm:$0xff] %v1702_v39  ;;  %v1742_v50 = vmul.f32 %v1738_v13, %v1593_v40  ;;  %v1758_v51 = vmul.f32 %v1754_v15, %v1593_v40  ;;  %v1774_v52 = vmul.f32 %v1770_v16, %v1593_v40 }
 0x7fb   : > { %1792 = vst [vmem:[#allocation2 + $0x40] sm:$0xff] %v1784_v42  ;;  %1794 = vst [vmem:[#allocation2 + $0x10] sm:$0xff] %v1786_v43  ;;  %v1785_v53 = vadd.f32 %v1777_v41, %v1726_v49  ;;  %1803 = sbr.rel (%p2020_p8) target bundleno = 2057 (0x809), region = 44 }
 0x7fc   : > { %1796 = vst [vmem:[#allocation2 + $0x60] sm:$0xff] %v1788_v44  ;;  %1798 = vst [vmem:[#allocation2 + $0x78] sm:$0xff] %v1790_v45  ;;  %v1787_v54 = vadd.f32 %v1779_v46, %v1742_v50  ;;  %v1789_v55 = vadd.f32 %v1781_v47, %v1758_v51  ;;  %v1791_v56 = vadd.f32 %v1783_v48, %v1774_v52 }
 0x7fd   : > { %1793 = vst [vmem:[#allocation2 + $0x20] sm:$0xff] %v1785_v53 }
 0x7fe   : > { %1795 = vst [vmem:[#allocation2 + $0x38] sm:$0xff] %v1787_v54  ;;  %1797 = vst [vmem:[#allocation2 + $0x70] sm:$0xff] %v1789_v55 }
 0x7ff   : > { %1799 = vst [vmem:[#allocation2 + $0x28] sm:$0xff] %v1791_v56 }
 0x800   : > { %v1804_v57 = vld [vmem:[#allocation2 + $0x30] sm:$0xff]  ;;  %v1805_v58 = vld [vmem:[#allocation2] sm:$0xff]  ;;  %v1806_v59 = vld [vmem:[#allocation2 + $0x58] sm:$0xff] }
 0x801   : > { %1820 = vst [vmem:[#allocation8] sm:$0xff] %v1804_v57  ;;  %1821 = vst [vmem:[#allocation8 + $0x8] sm:$0xff] %v1805_v58  ;;  %v1807_v60 = vld [vmem:[#allocation2 + $0x18] sm:$0xff]  ;;  %v1808_v61 = vld [vmem:[#allocation2 + $0x50] sm:$0xff] }
 0x802   : > { %1822 = vst [vmem:[#allocation8 + $0x10] sm:$0xff] %v1806_v59  ;;  %v1809_v62 = vld [vmem:[#allocation2 + $0x68] sm:$0xff]  ;;  %1823 = vst [vmem:[#allocation8 + $0x18] sm:$0xff] %v1807_v60  ;;  %v1812_v1 = vld [vmem:[#allocation2 + $0x40] sm:$0xff] }
 0x803   : > { %1824 = vst [vmem:[#allocation8 + $0x20] sm:$0xff] %v1808_v61  ;;  %1825 = vst [vmem:[#allocation8 + $0x28] sm:$0xff] %v1809_v62  ;;  %v1810_v63 = vld [vmem:[#allocation2 + $0x8] sm:$0xff]  ;;  %v1814_v3 = vld [vmem:[#allocation2 + $0x10] sm:$0xff] }
 0x804   : > { %v1811_v0 = vld [vmem:[#allocation2 + $0x48] sm:$0xff]  ;;  %1826 = vst [vmem:[#allocation8 + $0x30] sm:$0xff] %v1810_v63  ;;  %1828 = vst [vmem:[#allocation8 + $0x40] sm:$0xff] %v1812_v1  ;;  %v1813_v14 = vld [vmem:[#allocation2 + $0x20] sm:$0xff] }
 0x805   : > { %1827 = vst [vmem:[#allocation8 + $0x38] sm:$0xff] %v1811_v0  ;;  %v1815_v4 = vld [vmem:[#allocation2 + $0x38] sm:$0xff]  ;;  %1829 = vst [vmem:[#allocation8 + $0x48] sm:$0xff] %v1813_v14  ;;  %v1816_v5 = vld [vmem:[#allocation2 + $0x60] sm:$0xff] }
 0x806   : > { %1830 = vst [vmem:[#allocation8 + $0x50] sm:$0xff] %v1814_v3  ;;  %1831 = vst [vmem:[#allocation8 + $0x58] sm:$0xff] %v1815_v4  ;;  %v1817_v2 = vld [vmem:[#allocation2 + $0x70] sm:$0xff]  ;;  %v1818_v6 = vld [vmem:[#allocation2 + $0x78] sm:$0xff] }
 0x807   : > { %1832 = vst [vmem:[#allocation8 + $0x60] sm:$0xff] %v1816_v5  ;;  %1833 = vst [vmem:[#allocation8 + $0x68] sm:$0xff] %v1817_v2  ;;  %v1819_v7 = vld [vmem:[#allocation2 + $0x28] sm:$0xff] }
 0x808   : > { %1834 = vst [vmem:[#allocation8 + $0x70] sm:$0xff] %v1818_v6  ;;  %1835 = vst [vmem:[#allocation8 + $0x78] sm:$0xff] %v1819_v7 }
 0x809 PF: > { %p2043_p1 = scmp.eq.s32.totalorder %s2296_s16, 15  ;;  %s2254_s9 = smov [#allocation8]  }
 0x80a   : > { %s1842_s10 = sshll.u32 %s2254_s9, 4  ;;  %s1843_s10 = int_to_ptr.vmem [resolvable:$true] %s1842_s10 }
 0x80b   : > { %s2186_s11 = scalar_lea.vmem %s1843_s10, 2048  ;;  %p2193_p5 = scmp.lt.s32.totalorder %s1843_s10, %s1843_s10 }
 0x80c   : > { %p2187_p2 = scmp.ne.s32.totalorder %s1843_s10, %s2186_s11  ;;  %p2194_p6 = scmp.lt.s32.totalorder %s2186_s11, %s2186_s11 }
 0x80e   : > { %p2188_p3 = pnand %p2187_p2, %p2043_p1  ;;  %p2195_p10 = por %p2194_p6, %p2193_p5 }
 0x810   : > { %p2189_p4 = pneg %p2188_p3 }
 0x812   : > { %p2196_p12 = pnand %p2195_p10, %p2189_p4 }
 0x814   : > { %2199 = shalt.err (!%p2196_p12)
}
 0x815   : > { %s2255_s12 = smov 256   ;;  %s2256_s18 = smov 16  }
 0x816   : > { %2035 = dma.vmem_to_hbm [thread:$0]  (%p2043_p1), %s1843_s10, 2048, %s2746_s3, [#allocation7], %s2255_s12, %s2255_s12, %s2256_s18  }
 0x817   : > { %2231 = dma.done.wait (%p2043_p1), [#allocation7], 2048  }
 0x818   : > { %2233 = vsyncadd (%p2043_p1), [#allocation7], 4294965248 }
 0x819 PF: > { %p14_p11 = scmp.ge.s32.totalorder %s2299_s17, 18   ;;  %s2752_s12 = smov %s2240_s13 }
 0x81a   : > { %s2753_s13 = smov %s2244_s14  ;;  %s2754_s14 = smov %s2309_s20 }
 0x81b   : > { %s2755_s15 = smov %s2299_s17  ;;  %16 = sbr.rel (!%p14_p11) target bundleno = 4 (0x4), region = 89 }
 0x820   :  { %1858 = vsyncpa [#allocation6], 1 }
 0x821   :  { %1860 = vsyncpa [#allocation6 + $0x1], 1 }
 0x822   :  { %1861 = vsyncpa [#allocation7], 1 }
 0x823   :  { %1863 = vsyncpa [#allocation7 + $0x1], 1 }

</bundles_post_ra>
